<compile_context>
chip_gen: v7x
topology: tpu7x:2x2x1
jax: 0.10.0
libtpu: 0.0.40
codegen_flags: <defaults>
</compile_context>

<pallas_src>
import jax
import jax.numpy as jnp
from jax.experimental import pallas as pl
from jax.experimental.pallas import tpu as pltpu


def gru_seq_kernel(x_ref, wir_ref, wiz_ref, win_ref,
                   whr_ref, whz_ref, whn_ref,
                   br_ref, bz_ref, bin_ref, bhn_ref,
                   out_ref, henc_ref,
                   gir_s, giz_s, gin_s):
    TB, _ = x_ref.shape
    H = whr_ref.shape[0]
    T = out_ref.shape[0]
    B = TB // T                       # padded batch (multiple of 8)

    # ---- Prologue (once): hoist the x-dependent projections off the serial path.
    # r/z hidden biases are folded into these precomputed terms (they commute with
    # the sigmoid argument); b_hn must stay in-loop because it is scaled by r.
    x2d = x_ref[...]
    gir_s[...] = jnp.dot(x2d, wir_ref[...], preferred_element_type=jnp.float32) + br_ref[...]
    giz_s[...] = jnp.dot(x2d, wiz_ref[...], preferred_element_type=jnp.float32) + bz_ref[...]
    gin_s[...] = jnp.dot(x2d, win_ref[...], preferred_element_type=jnp.float32) + bin_ref[...]

    # Loop-invariant loads / broadcasts hoisted (JAX does not CSE broadcasts).
    whr = whr_ref[...]
    whz = whz_ref[...]
    whn = whn_ref[...]
    bhn = jnp.broadcast_to(bhn_ref[...], (B, H))

    # Identity matrix: per-step output transpose done on the MXU (guaranteed to
    # lower, keeps XLU idle, and avoids a wrapper-side XLA transpose pass).
    rows = jax.lax.broadcasted_iota(jnp.int32, (H, H), 0)
    cols = jax.lax.broadcasted_iota(jnp.int32, (H, H), 1)
    eye_h = (rows == cols).astype(jnp.float32)

    def step(t, h):
        off = pl.multiple_of(t * B, B)
        gi_r = gir_s[pl.ds(off, B), :]
        gi_z = giz_s[pl.ds(off, B), :]
        gi_n = gin_s[pl.ds(off, B), :]

        # Only h-dependent work stays on the serial critical path.
        gh_r = jnp.dot(h, whr, preferred_element_type=jnp.float32)
        gh_z = jnp.dot(h, whz, preferred_element_type=jnp.float32)
        gh_n = jnp.dot(h, whn, preferred_element_type=jnp.float32) + bhn

        r = jax.nn.sigmoid(gi_r + gh_r)
        z = jax.nn.sigmoid(gi_z + gh_z)
        n = jnp.tanh(gi_n + r * gh_n)
        h_new = (1.0 - z) * n + z * h

        # Fused exp (EUP) + MXU transpose: out[t] = exp(h_t)^T with shape (H, B).
        e_t = jax.lax.dot_general(
            eye_h, jnp.exp(h_new), (((1,), (1,)), ((), ())),
            preferred_element_type=jnp.float32)
        out_ref[t] = e_t.astype(out_ref.dtype)
        return h_new

    h0 = jnp.zeros((B, H), jnp.float32)
    h_last = jax.lax.fori_loop(0, T, step, h0, unroll=True)
    henc_ref[0] = h_last.astype(henc_ref.dtype)


def rnn_encoder_forward(x, w_ih, w_hh, b_ih, b_hh):
    """x: (T, B, F) float32.  Returns (exp(out).transpose(-2, -1), encoding)
    matching torch.nn.GRU(features_d, encode_dim) with h0 = 0."""
    T, B, F = x.shape
    H = w_hh.shape[1]

    x = jnp.asarray(x, jnp.float32)
    w_ih = jnp.asarray(w_ih, jnp.float32)
    w_hh = jnp.asarray(w_hh, jnp.float32)
    b_ih = jnp.asarray(b_ih, jnp.float32)
    b_hh = jnp.asarray(b_hh, jnp.float32)

    # Pad batch to the 8-sublane tile so every vector / MXU op uses full sublanes.
    B_pad = ((B + 7) // 8) * 8
    if B_pad != B:
        x = jnp.pad(x, ((0, 0), (0, B_pad - B), (0, 0)))
    x2d = x.reshape(T * B_pad, F)

    # Per-gate transposed weights (torch gate order r | z | n) — no in-kernel
    # lane-offset gate slicing.
    wir_t, wiz_t, win_t = w_ih[0:H].T, w_ih[H:2 * H].T, w_ih[2 * H:3 * H].T
    whr_t, whz_t, whn_t = w_hh[0:H].T, w_hh[H:2 * H].T, w_hh[2 * H:3 * H].T

    # Bias folding: b_hr/b_hz merge with b_ir/b_iz; b_hn stays separate.
    b_r = (b_ih[0:H] + b_hh[0:H])[None, :]
    b_z = (b_ih[H:2 * H] + b_hh[H:2 * H])[None, :]
    b_in = b_ih[2 * H:3 * H][None, :]
    b_hn = b_hh[2 * H:3 * H][None, :]

    out_pad, henc_pad = pl.pallas_call(
        gru_seq_kernel,
        out_shape=(
            jax.ShapeDtypeStruct((T, H, B_pad), jnp.float32),   # exp(h_t)^T per step
            jax.ShapeDtypeStruct((1, B_pad, H), jnp.float32),   # final hidden (encoding)
        ),
        grid_spec=pltpu.PrefetchScalarGridSpec(
            num_scalar_prefetch=0,
            grid=(1,),                                          # single grid point: whole
            in_specs=[                                          # recurrence is one unrolled loop
                pl.BlockSpec((T * B_pad, F), lambda i: (0, 0)),  # x flattened to (T*B, F)
                pl.BlockSpec((F, H), lambda i: (0, 0)),          # W_ir^T
                pl.BlockSpec((F, H), lambda i: (0, 0)),          # W_iz^T
                pl.BlockSpec((F, H), lambda i: (0, 0)),          # W_in^T
                pl.BlockSpec((H, H), lambda i: (0, 0)),          # W_hr^T
                pl.BlockSpec((H, H), lambda i: (0, 0)),          # W_hz^T
                pl.BlockSpec((H, H), lambda i: (0, 0)),          # W_hn^T
                pl.BlockSpec((1, H), lambda i: (0, 0)),          # b_r (folded)
                pl.BlockSpec((1, H), lambda i: (0, 0)),          # b_z (folded)
                pl.BlockSpec((1, H), lambda i: (0, 0)),          # b_in
                pl.BlockSpec((1, H), lambda i: (0, 0)),          # b_hn
            ],
            out_specs=[
                pl.BlockSpec((T, H, B_pad), lambda i: (0, 0, 0)),
                pl.BlockSpec((1, B_pad, H), lambda i: (0, 0, 0)),
            ],
            scratch_shapes=[pltpu.VMEM((T * B_pad, H), jnp.float32)] * 3,
        ),
        compiler_params=pltpu.CompilerParams(
            dimension_semantics=("arbitrary",),
        ),
    )(x2d, wir_t, wiz_t, win_t, whr_t, whz_t, whn_t, b_r, b_z, b_in, b_hn)

    # Only drop the batch padding (free XLA slices); exp + transpose already fused.
    return out_pad[:, :, :B], henc_pad[:, :B, :]


def gru_reference(x, w_ih, w_hh, b_ih, b_hh):
    """Pure-JAX reference matching torch.nn.GRU (single layer, h0 = 0)."""
    T, B, F = x.shape
    H = w_hh.shape[1]

    def step(h, x_t):
        gi = x_t @ w_ih.T + b_ih
        gh = h @ w_hh.T + b_hh
        r = jax.nn.sigmoid(gi[:, 0:H] + gh[:, 0:H])
        z = jax.nn.sigmoid(gi[:, H:2 * H] + gh[:, H:2 * H])
        n = jnp.tanh(gi[:, 2 * H:] + r * gh[:, 2 * H:])
        h_new = (1.0 - z) * n + z * h
        return h_new, h_new

    h_last, ys = jax.lax.scan(step, jnp.zeros((B, H), jnp.float32), x)
    return jnp.exp(jnp.swapaxes(ys, -2, -1)), h_last[None]


if __name__ == "__main__":
    # cfg: features_d=16, encode_dim=32 ; input x: (seq=8, batch=4, features_d=16)
    T, B, F, H = 8, 4, 16, 32

    key = jax.random.PRNGKey(0)
    kx, k1, k2, k3, k4 = jax.random.split(key, 5)
    bound = 1.0 / jnp.sqrt(H)

    x = jax.random.normal(kx, (T, B, F), dtype=jnp.float32)
    w_ih = jax.random.uniform(k1, (3 * H, F), jnp.float32, -bound, bound)  # gates r|z|n
    w_hh = jax.random.uniform(k2, (3 * H, H), jnp.float32, -bound, bound)
    b_ih = jax.random.uniform(k3, (3 * H,), jnp.float32, -bound, bound)
    b_hh = jax.random.uniform(k4, (3 * H,), jnp.float32, -bound, bound)

    out, encoding = rnn_encoder_forward(x, w_ih, w_hh, b_ih, b_hh)
    jax.block_until_ready((out, encoding))

    ref_out, ref_enc = gru_reference(x, w_ih, w_hh, b_ih, b_hh)
    assert out.shape == (T, H, B) and encoding.shape == (1, B, H)
    assert jnp.allclose(out, ref_out, atol=1e-5, rtol=1e-5)
    assert jnp.allclose(encoding, ref_enc, atol=1e-5, rtol=1e-5)

    print("KERNEL_OK")
</pallas_src>

<mosaic_0001>
module attributes {stable_mosaic.version = 11 : i64} {
  func.func @gru_seq_kernel(%arg0: i32, %arg1: memref<64x16xf32, #tpu.memory_space<vmem>>, %arg2: memref<16x32xf32, #tpu.memory_space<vmem>>, %arg3: memref<16x32xf32, #tpu.memory_space<vmem>>, %arg4: memref<16x32xf32, #tpu.memory_space<vmem>>, %arg5: memref<32x32xf32, #tpu.memory_space<vmem>>, %arg6: memref<32x32xf32, #tpu.memory_space<vmem>>, %arg7: memref<32x32xf32, #tpu.memory_space<vmem>>, %arg8: memref<1x32xf32, #tpu.memory_space<vmem>>, %arg9: memref<1x32xf32, #tpu.memory_space<vmem>>, %arg10: memref<1x32xf32, #tpu.memory_space<vmem>>, %arg11: memref<1x32xf32, #tpu.memory_space<vmem>>, %arg12: memref<8x32x8xf32, #tpu.memory_space<vmem>>, %arg13: memref<1x8x32xf32, #tpu.memory_space<vmem>>, %arg14: memref<64x32xf32, #tpu.memory_space<vmem>>, %arg15: memref<64x32xf32, #tpu.memory_space<vmem>>, %arg16: memref<64x32xf32, #tpu.memory_space<vmem>>) attributes {dimension_semantics = [#tpu.dimension_semantics<arbitrary>], iteration_bounds = array<i64: 1>, scalar_prefetch = 0 : i64, scratch_operands = 3 : i64, tpu.core_type = #tpu.core_type<tc>, window_params = [{pipeline_mode = #tpu.pipeline_mode<synchronous>, transform_indices = @transform_0, window_bounds = array<i64: 64, 16>}, {pipeline_mode = #tpu.pipeline_mode<synchronous>, transform_indices = @transform_1, window_bounds = array<i64: 16, 32>}, {pipeline_mode = #tpu.pipeline_mode<synchronous>, transform_indices = @transform_2, window_bounds = array<i64: 16, 32>}, {pipeline_mode = #tpu.pipeline_mode<synchronous>, transform_indices = @transform_3, window_bounds = array<i64: 16, 32>}, {pipeline_mode = #tpu.pipeline_mode<synchronous>, transform_indices = @transform_4, window_bounds = array<i64: 32, 32>}, {pipeline_mode = #tpu.pipeline_mode<synchronous>, transform_indices = @transform_5, window_bounds = array<i64: 32, 32>}, {pipeline_mode = #tpu.pipeline_mode<synchronous>, transform_indices = @transform_6, window_bounds = array<i64: 32, 32>}, {pipeline_mode = #tpu.pipeline_mode<synchronous>, transform_indices = @transform_7, window_bounds = array<i64: 1, 32>}, {pipeline_mode = #tpu.pipeline_mode<synchronous>, transform_indices = @transform_8, window_bounds = array<i64: 1, 32>}, {pipeline_mode = #tpu.pipeline_mode<synchronous>, transform_indices = @transform_9, window_bounds = array<i64: 1, 32>}, {pipeline_mode = #tpu.pipeline_mode<synchronous>, transform_indices = @transform_10, window_bounds = array<i64: 1, 32>}, {pipeline_mode = #tpu.pipeline_mode<synchronous>, transform_indices = @transform_11, window_bounds = array<i64: 8, 32, 8>}, {pipeline_mode = #tpu.pipeline_mode<synchronous>, transform_indices = @transform_12, window_bounds = array<i64: 1, 8, 32>}]} {
    %c0 = arith.constant 0 : index
    %c0_0 = arith.constant 0 : index
    %0 = vector.load %arg1[%c0, %c0_0] : memref<64x16xf32, #tpu.memory_space<vmem>>, vector<64x16xf32>
    %c0_1 = arith.constant 0 : index
    %c0_2 = arith.constant 0 : index
    %1 = vector.load %arg2[%c0_1, %c0_2] : memref<16x32xf32, #tpu.memory_space<vmem>>, vector<16x32xf32>
    %cst = arith.constant dense<0.000000e+00> : vector<64x32xf32>
    %2 = tpu.matmul %0, %1, %cst {dimension_numbers = #tpu.dot_dimension_numbers<[1], [0], [0], [1], [0, 0, 1, 1], [], []>} : vector<64x16xf32>, vector<16x32xf32>, vector<64x32xf32> -> vector<64x32xf32>
    %c0_3 = arith.constant 0 : index
    %c0_4 = arith.constant 0 : index
    %3 = vector.load %arg8[%c0_3, %c0_4] : memref<1x32xf32, #tpu.memory_space<vmem>>, vector<1x32xf32>
    %4 = vector.broadcast %3 : vector<1x32xf32> to vector<64x32xf32>
    %5 = arith.addf %2, %4 : vector<64x32xf32>
    %c0_5 = arith.constant 0 : index
    %c0_6 = arith.constant 0 : index
    %6 = vector.load %arg14[%c0_5, %c0_6] : memref<64x32xf32, #tpu.memory_space<vmem>>, vector<64x32xf32>
    tpu.vector_store %arg14[%c0_5, %c0_6], %5 {strides = array<i32>} : memref<64x32xf32, #tpu.memory_space<vmem>>, vector<64x32xf32>,
    %c0_7 = arith.constant 0 : index
    %c0_8 = arith.constant 0 : index
    %7 = vector.load %arg3[%c0_7, %c0_8] : memref<16x32xf32, #tpu.memory_space<vmem>>, vector<16x32xf32>
    %cst_9 = arith.constant dense<0.000000e+00> : vector<64x32xf32>
    %8 = tpu.matmul %0, %7, %cst_9 {dimension_numbers = #tpu.dot_dimension_numbers<[1], [0], [0], [1], [0, 0, 1, 1], [], []>} : vector<64x16xf32>, vector<16x32xf32>, vector<64x32xf32> -> vector<64x32xf32>
    %c0_10 = arith.constant 0 : index
    %c0_11 = arith.constant 0 : index
    %9 = vector.load %arg9[%c0_10, %c0_11] : memref<1x32xf32, #tpu.memory_space<vmem>>, vector<1x32xf32>
    %10 = vector.broadcast %9 : vector<1x32xf32> to vector<64x32xf32>
    %11 = arith.addf %8, %10 : vector<64x32xf32>
    %c0_12 = arith.constant 0 : index
    %c0_13 = arith.constant 0 : index
    %12 = vector.load %arg15[%c0_12, %c0_13] : memref<64x32xf32, #tpu.memory_space<vmem>>, vector<64x32xf32>
    tpu.vector_store %arg15[%c0_12, %c0_13], %11 {strides = array<i32>} : memref<64x32xf32, #tpu.memory_space<vmem>>, vector<64x32xf32>,
    %c0_14 = arith.constant 0 : index
    %c0_15 = arith.constant 0 : index
    %13 = vector.load %arg4[%c0_14, %c0_15] : memref<16x32xf32, #tpu.memory_space<vmem>>, vector<16x32xf32>
    %cst_16 = arith.constant dense<0.000000e+00> : vector<64x32xf32>
    %14 = tpu.matmul %0, %13, %cst_16 {dimension_numbers = #tpu.dot_dimension_numbers<[1], [0], [0], [1], [0, 0, 1, 1], [], []>} : vector<64x16xf32>, vector<16x32xf32>, vector<64x32xf32> -> vector<64x32xf32>
    %c0_17 = arith.constant 0 : index
    %c0_18 = arith.constant 0 : index
    %15 = vector.load %arg10[%c0_17, %c0_18] : memref<1x32xf32, #tpu.memory_space<vmem>>, vector<1x32xf32>
    %16 = vector.broadcast %15 : vector<1x32xf32> to vector<64x32xf32>
    %17 = arith.addf %14, %16 : vector<64x32xf32>
    %c0_19 = arith.constant 0 : index
    %c0_20 = arith.constant 0 : index
    %18 = vector.load %arg16[%c0_19, %c0_20] : memref<64x32xf32, #tpu.memory_space<vmem>>, vector<64x32xf32>
    tpu.vector_store %arg16[%c0_19, %c0_20], %17 {strides = array<i32>} : memref<64x32xf32, #tpu.memory_space<vmem>>, vector<64x32xf32>,
    %c0_21 = arith.constant 0 : index
    %c0_22 = arith.constant 0 : index
    %19 = vector.load %arg5[%c0_21, %c0_22] : memref<32x32xf32, #tpu.memory_space<vmem>>, vector<32x32xf32>
    %c0_23 = arith.constant 0 : index
    %c0_24 = arith.constant 0 : index
    %20 = vector.load %arg6[%c0_23, %c0_24] : memref<32x32xf32, #tpu.memory_space<vmem>>, vector<32x32xf32>
    %c0_25 = arith.constant 0 : index
    %c0_26 = arith.constant 0 : index
    %21 = vector.load %arg7[%c0_25, %c0_26] : memref<32x32xf32, #tpu.memory_space<vmem>>, vector<32x32xf32>
    %c0_27 = arith.constant 0 : index
    %c0_28 = arith.constant 0 : index
    %22 = vector.load %arg11[%c0_27, %c0_28] : memref<1x32xf32, #tpu.memory_space<vmem>>, vector<1x32xf32>
    %23 = vector.shape_cast %22 : vector<1x32xf32> to vector<1x32xf32>
    %24 = vector.broadcast %23 : vector<1x32xf32> to vector<8x32xf32>
    %25 = tpu.iota {dimensions = array<i32: 0>} : vector<32x32xi32>
    %26 = tpu.iota {dimensions = array<i32: 1>} : vector<32x32xi32>
    %27 = arith.cmpi eq, %25, %26 : vector<32x32xi32>
    %28 = arith.extui %27 : vector<32x32xi1> to vector<32x32xi32>
    %29 = arith.sitofp %28 : vector<32x32xi32> to vector<32x32xf32>
    %cst_29 = arith.constant 0.000000e+00 : f32
    %30 = vector.broadcast %cst_29 : f32 to vector<8x32xf32>
    %c0_i32 = arith.constant 0 : i32
    %c8_i32 = arith.constant 8 : i32
    %31 = arith.muli %c0_i32, %c8_i32 : i32
    %32 = tpu.assume_multiple %31, 8 : i32
    %33 = arith.index_cast %32 : i32 to index
    %c0_30 = arith.constant 0 : index
    %34 = vector.load %arg14[%33, %c0_30] : memref<64x32xf32, #tpu.memory_space<vmem>>, vector<8x32xf32>
    %35 = arith.index_cast %32 : i32 to index
    %c0_31 = arith.constant 0 : index
    %36 = vector.load %arg15[%35, %c0_31] : memref<64x32xf32, #tpu.memory_space<vmem>>, vector<8x32xf32>
    %37 = arith.index_cast %32 : i32 to index
    %c0_32 = arith.constant 0 : index
    %38 = vector.load %arg16[%37, %c0_32] : memref<64x32xf32, #tpu.memory_space<vmem>>, vector<8x32xf32>
    %cst_33 = arith.constant dense<0.000000e+00> : vector<8x32xf32>
    %39 = tpu.matmul %30, %19, %cst_33 {dimension_numbers = #tpu.dot_dimension_numbers<[1], [0], [0], [1], [0, 0, 1, 1], [], []>} : vector<8x32xf32>, vector<32x32xf32>, vector<8x32xf32> -> vector<8x32xf32>
    %cst_34 = arith.constant dense<0.000000e+00> : vector<8x32xf32>
    %40 = tpu.matmul %30, %20, %cst_34 {dimension_numbers = #tpu.dot_dimension_numbers<[1], [0], [0], [1], [0, 0, 1, 1], [], []>} : vector<8x32xf32>, vector<32x32xf32>, vector<8x32xf32> -> vector<8x32xf32>
    %cst_35 = arith.constant dense<0.000000e+00> : vector<8x32xf32>
    %41 = tpu.matmul %30, %21, %cst_35 {dimension_numbers = #tpu.dot_dimension_numbers<[1], [0], [0], [1], [0, 0, 1, 1], [], []>} : vector<8x32xf32>, vector<32x32xf32>, vector<8x32xf32> -> vector<8x32xf32>
    %42 = arith.addf %41, %24 : vector<8x32xf32>
    %43 = arith.addf %34, %39 : vector<8x32xf32>
    %44 = arith.negf %43 : vector<8x32xf32>
    %45 = math.exp %44 : vector<8x32xf32>
    %cst_36 = arith.constant 1.000000e+00 : f32
    %46 = vector.broadcast %cst_36 : f32 to vector<8x32xf32>
    %47 = arith.addf %46, %45 : vector<8x32xf32>
    %48 = arith.divf %46, %47 : vector<8x32xf32>
    %49 = arith.addf %36, %40 : vector<8x32xf32>
    %50 = arith.negf %49 : vector<8x32xf32>
    %51 = math.exp %50 : vector<8x32xf32>
    %cst_37 = arith.constant 1.000000e+00 : f32
    %52 = vector.broadcast %cst_37 : f32 to vector<8x32xf32>
    %53 = arith.addf %52, %51 : vector<8x32xf32>
    %54 = arith.divf %52, %53 : vector<8x32xf32>
    %55 = arith.mulf %48, %42 : vector<8x32xf32>
    %56 = arith.addf %38, %55 : vector<8x32xf32>
    %57 = math.tanh %56 : vector<8x32xf32>
    %cst_38 = arith.constant 1.000000e+00 : f32
    %58 = vector.broadcast %cst_38 : f32 to vector<8x32xf32>
    %59 = arith.subf %58, %54 : vector<8x32xf32>
    %60 = arith.mulf %59, %57 : vector<8x32xf32>
    %61 = arith.mulf %54, %30 : vector<8x32xf32>
    %62 = arith.addf %60, %61 : vector<8x32xf32>
    %63 = math.exp %62 : vector<8x32xf32>
    %cst_39 = arith.constant dense<0.000000e+00> : vector<32x8xf32>
    %64 = tpu.matmul %29, %63, %cst_39 {dimension_numbers = #tpu.dot_dimension_numbers<[1], [1], [0], [0], [0, 0, 1, 0], [], []>} : vector<32x32xf32>, vector<8x32xf32>, vector<32x8xf32> -> vector<32x8xf32>
    %65 = arith.index_cast %c0_i32 : i32 to index
    %c0_40 = arith.constant 0 : index
    %c0_41 = arith.constant 0 : index
    %66 = vector.load %arg12[%65, %c0_40, %c0_41] : memref<8x32x8xf32, #tpu.memory_space<vmem>>, vector<1x32x8xf32>
    %67 = vector.shape_cast %66 : vector<1x32x8xf32> to vector<32x8xf32>
    %68 = vector.shape_cast %64 : vector<32x8xf32> to vector<1x32x8xf32>
    tpu.vector_store %arg12[%65, %c0_40, %c0_41], %68 {strides = array<i32>} : memref<8x32x8xf32, #tpu.memory_space<vmem>>, vector<1x32x8xf32>,
    %c1_i32 = arith.constant 1 : i32
    %c8_i32_42 = arith.constant 8 : i32
    %69 = arith.muli %c1_i32, %c8_i32_42 : i32
    %70 = tpu.assume_multiple %69, 8 : i32
    %71 = arith.index_cast %70 : i32 to index
    %c0_43 = arith.constant 0 : index
    %72 = vector.load %arg14[%71, %c0_43] : memref<64x32xf32, #tpu.memory_space<vmem>>, vector<8x32xf32>
    %73 = arith.index_cast %70 : i32 to index
    %c0_44 = arith.constant 0 : index
    %74 = vector.load %arg15[%73, %c0_44] : memref<64x32xf32, #tpu.memory_space<vmem>>, vector<8x32xf32>
    %75 = arith.index_cast %70 : i32 to index
    %c0_45 = arith.constant 0 : index
    %76 = vector.load %arg16[%75, %c0_45] : memref<64x32xf32, #tpu.memory_space<vmem>>, vector<8x32xf32>
    %cst_46 = arith.constant dense<0.000000e+00> : vector<8x32xf32>
    %77 = tpu.matmul %62, %19, %cst_46 {dimension_numbers = #tpu.dot_dimension_numbers<[1], [0], [0], [1], [0, 0, 1, 1], [], []>} : vector<8x32xf32>, vector<32x32xf32>, vector<8x32xf32> -> vector<8x32xf32>
    %cst_47 = arith.constant dense<0.000000e+00> : vector<8x32xf32>
    %78 = tpu.matmul %62, %20, %cst_47 {dimension_numbers = #tpu.dot_dimension_numbers<[1], [0], [0], [1], [0, 0, 1, 1], [], []>} : vector<8x32xf32>, vector<32x32xf32>, vector<8x32xf32> -> vector<8x32xf32>
    %cst_48 = arith.constant dense<0.000000e+00> : vector<8x32xf32>
    %79 = tpu.matmul %62, %21, %cst_48 {dimension_numbers = #tpu.dot_dimension_numbers<[1], [0], [0], [1], [0, 0, 1, 1], [], []>} : vector<8x32xf32>, vector<32x32xf32>, vector<8x32xf32> -> vector<8x32xf32>
    %80 = arith.addf %79, %24 : vector<8x32xf32>
    %81 = arith.addf %72, %77 : vector<8x32xf32>
    %82 = arith.negf %81 : vector<8x32xf32>
    %83 = math.exp %82 : vector<8x32xf32>
    %cst_49 = arith.constant 1.000000e+00 : f32
    %84 = vector.broadcast %cst_49 : f32 to vector<8x32xf32>
    %85 = arith.addf %84, %83 : vector<8x32xf32>
    %86 = arith.divf %84, %85 : vector<8x32xf32>
    %87 = arith.addf %74, %78 : vector<8x32xf32>
    %88 = arith.negf %87 : vector<8x32xf32>
    %89 = math.exp %88 : vector<8x32xf32>
    %cst_50 = arith.constant 1.000000e+00 : f32
    %90 = vector.broadcast %cst_50 : f32 to vector<8x32xf32>
    %91 = arith.addf %90, %89 : vector<8x32xf32>
    %92 = arith.divf %90, %91 : vector<8x32xf32>
    %93 = arith.mulf %86, %80 : vector<8x32xf32>
    %94 = arith.addf %76, %93 : vector<8x32xf32>
    %95 = math.tanh %94 : vector<8x32xf32>
    %cst_51 = arith.constant 1.000000e+00 : f32
    %96 = vector.broadcast %cst_51 : f32 to vector<8x32xf32>
    %97 = arith.subf %96, %92 : vector<8x32xf32>
    %98 = arith.mulf %97, %95 : vector<8x32xf32>
    %99 = arith.mulf %92, %62 : vector<8x32xf32>
    %100 = arith.addf %98, %99 : vector<8x32xf32>
    %101 = math.exp %100 : vector<8x32xf32>
    %cst_52 = arith.constant dense<0.000000e+00> : vector<32x8xf32>
    %102 = tpu.matmul %29, %101, %cst_52 {dimension_numbers = #tpu.dot_dimension_numbers<[1], [1], [0], [0], [0, 0, 1, 0], [], []>} : vector<32x32xf32>, vector<8x32xf32>, vector<32x8xf32> -> vector<32x8xf32>
    %103 = arith.index_cast %c1_i32 : i32 to index
    %c0_53 = arith.constant 0 : index
    %c0_54 = arith.constant 0 : index
    %104 = vector.load %arg12[%103, %c0_53, %c0_54] : memref<8x32x8xf32, #tpu.memory_space<vmem>>, vector<1x32x8xf32>
    %105 = vector.shape_cast %104 : vector<1x32x8xf32> to vector<32x8xf32>
    %106 = vector.shape_cast %102 : vector<32x8xf32> to vector<1x32x8xf32>
    tpu.vector_store %arg12[%103, %c0_53, %c0_54], %106 {strides = array<i32>} : memref<8x32x8xf32, #tpu.memory_space<vmem>>, vector<1x32x8xf32>,
    %c2_i32 = arith.constant 2 : i32
    %c8_i32_55 = arith.constant 8 : i32
    %107 = arith.muli %c2_i32, %c8_i32_55 : i32
    %108 = tpu.assume_multiple %107, 8 : i32
    %109 = arith.index_cast %108 : i32 to index
    %c0_56 = arith.constant 0 : index
    %110 = vector.load %arg14[%109, %c0_56] : memref<64x32xf32, #tpu.memory_space<vmem>>, vector<8x32xf32>
    %111 = arith.index_cast %108 : i32 to index
    %c0_57 = arith.constant 0 : index
    %112 = vector.load %arg15[%111, %c0_57] : memref<64x32xf32, #tpu.memory_space<vmem>>, vector<8x32xf32>
    %113 = arith.index_cast %108 : i32 to index
    %c0_58 = arith.constant 0 : index
    %114 = vector.load %arg16[%113, %c0_58] : memref<64x32xf32, #tpu.memory_space<vmem>>, vector<8x32xf32>
    %cst_59 = arith.constant dense<0.000000e+00> : vector<8x32xf32>
    %115 = tpu.matmul %100, %19, %cst_59 {dimension_numbers = #tpu.dot_dimension_numbers<[1], [0], [0], [1], [0, 0, 1, 1], [], []>} : vector<8x32xf32>, vector<32x32xf32>, vector<8x32xf32> -> vector<8x32xf32>
    %cst_60 = arith.constant dense<0.000000e+00> : vector<8x32xf32>
    %116 = tpu.matmul %100, %20, %cst_60 {dimension_numbers = #tpu.dot_dimension_numbers<[1], [0], [0], [1], [0, 0, 1, 1], [], []>} : vector<8x32xf32>, vector<32x32xf32>, vector<8x32xf32> -> vector<8x32xf32>
    %cst_61 = arith.constant dense<0.000000e+00> : vector<8x32xf32>
    %117 = tpu.matmul %100, %21, %cst_61 {dimension_numbers = #tpu.dot_dimension_numbers<[1], [0], [0], [1], [0, 0, 1, 1], [], []>} : vector<8x32xf32>, vector<32x32xf32>, vector<8x32xf32> -> vector<8x32xf32>
    %118 = arith.addf %117, %24 : vector<8x32xf32>
    %119 = arith.addf %110, %115 : vector<8x32xf32>
    %120 = arith.negf %119 : vector<8x32xf32>
    %121 = math.exp %120 : vector<8x32xf32>
    %cst_62 = arith.constant 1.000000e+00 : f32
    %122 = vector.broadcast %cst_62 : f32 to vector<8x32xf32>
    %123 = arith.addf %122, %121 : vector<8x32xf32>
    %124 = arith.divf %122, %123 : vector<8x32xf32>
    %125 = arith.addf %112, %116 : vector<8x32xf32>
    %126 = arith.negf %125 : vector<8x32xf32>
    %127 = math.exp %126 : vector<8x32xf32>
    %cst_63 = arith.constant 1.000000e+00 : f32
    %128 = vector.broadcast %cst_63 : f32 to vector<8x32xf32>
    %129 = arith.addf %128, %127 : vector<8x32xf32>
    %130 = arith.divf %128, %129 : vector<8x32xf32>
    %131 = arith.mulf %124, %118 : vector<8x32xf32>
    %132 = arith.addf %114, %131 : vector<8x32xf32>
    %133 = math.tanh %132 : vector<8x32xf32>
    %cst_64 = arith.constant 1.000000e+00 : f32
    %134 = vector.broadcast %cst_64 : f32 to vector<8x32xf32>
    %135 = arith.subf %134, %130 : vector<8x32xf32>
    %136 = arith.mulf %135, %133 : vector<8x32xf32>
    %137 = arith.mulf %130, %100 : vector<8x32xf32>
    %138 = arith.addf %136, %137 : vector<8x32xf32>
    %139 = math.exp %138 : vector<8x32xf32>
    %cst_65 = arith.constant dense<0.000000e+00> : vector<32x8xf32>
    %140 = tpu.matmul %29, %139, %cst_65 {dimension_numbers = #tpu.dot_dimension_numbers<[1], [1], [0], [0], [0, 0, 1, 0], [], []>} : vector<32x32xf32>, vector<8x32xf32>, vector<32x8xf32> -> vector<32x8xf32>
    %141 = arith.index_cast %c2_i32 : i32 to index
    %c0_66 = arith.constant 0 : index
    %c0_67 = arith.constant 0 : index
    %142 = vector.load %arg12[%141, %c0_66, %c0_67] : memref<8x32x8xf32, #tpu.memory_space<vmem>>, vector<1x32x8xf32>
    %143 = vector.shape_cast %142 : vector<1x32x8xf32> to vector<32x8xf32>
    %144 = vector.shape_cast %140 : vector<32x8xf32> to vector<1x32x8xf32>
    tpu.vector_store %arg12[%141, %c0_66, %c0_67], %144 {strides = array<i32>} : memref<8x32x8xf32, #tpu.memory_space<vmem>>, vector<1x32x8xf32>,
    %c3_i32 = arith.constant 3 : i32
    %c8_i32_68 = arith.constant 8 : i32
    %145 = arith.muli %c3_i32, %c8_i32_68 : i32
    %146 = tpu.assume_multiple %145, 8 : i32
    %147 = arith.index_cast %146 : i32 to index
    %c0_69 = arith.constant 0 : index
    %148 = vector.load %arg14[%147, %c0_69] : memref<64x32xf32, #tpu.memory_space<vmem>>, vector<8x32xf32>
    %149 = arith.index_cast %146 : i32 to index
    %c0_70 = arith.constant 0 : index
    %150 = vector.load %arg15[%149, %c0_70] : memref<64x32xf32, #tpu.memory_space<vmem>>, vector<8x32xf32>
    %151 = arith.index_cast %146 : i32 to index
    %c0_71 = arith.constant 0 : index
    %152 = vector.load %arg16[%151, %c0_71] : memref<64x32xf32, #tpu.memory_space<vmem>>, vector<8x32xf32>
    %cst_72 = arith.constant dense<0.000000e+00> : vector<8x32xf32>
    %153 = tpu.matmul %138, %19, %cst_72 {dimension_numbers = #tpu.dot_dimension_numbers<[1], [0], [0], [1], [0, 0, 1, 1], [], []>} : vector<8x32xf32>, vector<32x32xf32>, vector<8x32xf32> -> vector<8x32xf32>
    %cst_73 = arith.constant dense<0.000000e+00> : vector<8x32xf32>
    %154 = tpu.matmul %138, %20, %cst_73 {dimension_numbers = #tpu.dot_dimension_numbers<[1], [0], [0], [1], [0, 0, 1, 1], [], []>} : vector<8x32xf32>, vector<32x32xf32>, vector<8x32xf32> -> vector<8x32xf32>
    %cst_74 = arith.constant dense<0.000000e+00> : vector<8x32xf32>
    %155 = tpu.matmul %138, %21, %cst_74 {dimension_numbers = #tpu.dot_dimension_numbers<[1], [0], [0], [1], [0, 0, 1, 1], [], []>} : vector<8x32xf32>, vector<32x32xf32>, vector<8x32xf32> -> vector<8x32xf32>
    %156 = arith.addf %155, %24 : vector<8x32xf32>
    %157 = arith.addf %148, %153 : vector<8x32xf32>
    %158 = arith.negf %157 : vector<8x32xf32>
    %159 = math.exp %158 : vector<8x32xf32>
    %cst_75 = arith.constant 1.000000e+00 : f32
    %160 = vector.broadcast %cst_75 : f32 to vector<8x32xf32>
    %161 = arith.addf %160, %159 : vector<8x32xf32>
    %162 = arith.divf %160, %161 : vector<8x32xf32>
    %163 = arith.addf %150, %154 : vector<8x32xf32>
    %164 = arith.negf %163 : vector<8x32xf32>
    %165 = math.exp %164 : vector<8x32xf32>
    %cst_76 = arith.constant 1.000000e+00 : f32
    %166 = vector.broadcast %cst_76 : f32 to vector<8x32xf32>
    %167 = arith.addf %166, %165 : vector<8x32xf32>
    %168 = arith.divf %166, %167 : vector<8x32xf32>
    %169 = arith.mulf %162, %156 : vector<8x32xf32>
    %170 = arith.addf %152, %169 : vector<8x32xf32>
    %171 = math.tanh %170 : vector<8x32xf32>
    %cst_77 = arith.constant 1.000000e+00 : f32
    %172 = vector.broadcast %cst_77 : f32 to vector<8x32xf32>
    %173 = arith.subf %172, %168 : vector<8x32xf32>
    %174 = arith.mulf %173, %171 : vector<8x32xf32>
    %175 = arith.mulf %168, %138 : vector<8x32xf32>
    %176 = arith.addf %174, %175 : vector<8x32xf32>
    %177 = math.exp %176 : vector<8x32xf32>
    %cst_78 = arith.constant dense<0.000000e+00> : vector<32x8xf32>
    %178 = tpu.matmul %29, %177, %cst_78 {dimension_numbers = #tpu.dot_dimension_numbers<[1], [1], [0], [0], [0, 0, 1, 0], [], []>} : vector<32x32xf32>, vector<8x32xf32>, vector<32x8xf32> -> vector<32x8xf32>
    %179 = arith.index_cast %c3_i32 : i32 to index
    %c0_79 = arith.constant 0 : index
    %c0_80 = arith.constant 0 : index
    %180 = vector.load %arg12[%179, %c0_79, %c0_80] : memref<8x32x8xf32, #tpu.memory_space<vmem>>, vector<1x32x8xf32>
    %181 = vector.shape_cast %180 : vector<1x32x8xf32> to vector<32x8xf32>
    %182 = vector.shape_cast %178 : vector<32x8xf32> to vector<1x32x8xf32>
    tpu.vector_store %arg12[%179, %c0_79, %c0_80], %182 {strides = array<i32>} : memref<8x32x8xf32, #tpu.memory_space<vmem>>, vector<1x32x8xf32>,
    %c4_i32 = arith.constant 4 : i32
    %c8_i32_81 = arith.constant 8 : i32
    %183 = arith.muli %c4_i32, %c8_i32_81 : i32
    %184 = tpu.assume_multiple %183, 8 : i32
    %185 = arith.index_cast %184 : i32 to index
    %c0_82 = arith.constant 0 : index
    %186 = vector.load %arg14[%185, %c0_82] : memref<64x32xf32, #tpu.memory_space<vmem>>, vector<8x32xf32>
    %187 = arith.index_cast %184 : i32 to index
    %c0_83 = arith.constant 0 : index
    %188 = vector.load %arg15[%187, %c0_83] : memref<64x32xf32, #tpu.memory_space<vmem>>, vector<8x32xf32>
    %189 = arith.index_cast %184 : i32 to index
    %c0_84 = arith.constant 0 : index
    %190 = vector.load %arg16[%189, %c0_84] : memref<64x32xf32, #tpu.memory_space<vmem>>, vector<8x32xf32>
    %cst_85 = arith.constant dense<0.000000e+00> : vector<8x32xf32>
    %191 = tpu.matmul %176, %19, %cst_85 {dimension_numbers = #tpu.dot_dimension_numbers<[1], [0], [0], [1], [0, 0, 1, 1], [], []>} : vector<8x32xf32>, vector<32x32xf32>, vector<8x32xf32> -> vector<8x32xf32>
    %cst_86 = arith.constant dense<0.000000e+00> : vector<8x32xf32>
    %192 = tpu.matmul %176, %20, %cst_86 {dimension_numbers = #tpu.dot_dimension_numbers<[1], [0], [0], [1], [0, 0, 1, 1], [], []>} : vector<8x32xf32>, vector<32x32xf32>, vector<8x32xf32> -> vector<8x32xf32>
    %cst_87 = arith.constant dense<0.000000e+00> : vector<8x32xf32>
    %193 = tpu.matmul %176, %21, %cst_87 {dimension_numbers = #tpu.dot_dimension_numbers<[1], [0], [0], [1], [0, 0, 1, 1], [], []>} : vector<8x32xf32>, vector<32x32xf32>, vector<8x32xf32> -> vector<8x32xf32>
    %194 = arith.addf %193, %24 : vector<8x32xf32>
    %195 = arith.addf %186, %191 : vector<8x32xf32>
    %196 = arith.negf %195 : vector<8x32xf32>
    %197 = math.exp %196 : vector<8x32xf32>
    %cst_88 = arith.constant 1.000000e+00 : f32
    %198 = vector.broadcast %cst_88 : f32 to vector<8x32xf32>
    %199 = arith.addf %198, %197 : vector<8x32xf32>
    %200 = arith.divf %198, %199 : vector<8x32xf32>
    %201 = arith.addf %188, %192 : vector<8x32xf32>
    %202 = arith.negf %201 : vector<8x32xf32>
    %203 = math.exp %202 : vector<8x32xf32>
    %cst_89 = arith.constant 1.000000e+00 : f32
    %204 = vector.broadcast %cst_89 : f32 to vector<8x32xf32>
    %205 = arith.addf %204, %203 : vector<8x32xf32>
    %206 = arith.divf %204, %205 : vector<8x32xf32>
    %207 = arith.mulf %200, %194 : vector<8x32xf32>
    %208 = arith.addf %190, %207 : vector<8x32xf32>
    %209 = math.tanh %208 : vector<8x32xf32>
    %cst_90 = arith.constant 1.000000e+00 : f32
    %210 = vector.broadcast %cst_90 : f32 to vector<8x32xf32>
    %211 = arith.subf %210, %206 : vector<8x32xf32>
    %212 = arith.mulf %211, %209 : vector<8x32xf32>
    %213 = arith.mulf %206, %176 : vector<8x32xf32>
    %214 = arith.addf %212, %213 : vector<8x32xf32>
    %215 = math.exp %214 : vector<8x32xf32>
    %cst_91 = arith.constant dense<0.000000e+00> : vector<32x8xf32>
    %216 = tpu.matmul %29, %215, %cst_91 {dimension_numbers = #tpu.dot_dimension_numbers<[1], [1], [0], [0], [0, 0, 1, 0], [], []>} : vector<32x32xf32>, vector<8x32xf32>, vector<32x8xf32> -> vector<32x8xf32>
    %217 = arith.index_cast %c4_i32 : i32 to index
    %c0_92 = arith.constant 0 : index
    %c0_93 = arith.constant 0 : index
    %218 = vector.load %arg12[%217, %c0_92, %c0_93] : memref<8x32x8xf32, #tpu.memory_space<vmem>>, vector<1x32x8xf32>
    %219 = vector.shape_cast %218 : vector<1x32x8xf32> to vector<32x8xf32>
    %220 = vector.shape_cast %216 : vector<32x8xf32> to vector<1x32x8xf32>
    tpu.vector_store %arg12[%217, %c0_92, %c0_93], %220 {strides = array<i32>} : memref<8x32x8xf32, #tpu.memory_space<vmem>>, vector<1x32x8xf32>,
    %c5_i32 = arith.constant 5 : i32
    %c8_i32_94 = arith.constant 8 : i32
    %221 = arith.muli %c5_i32, %c8_i32_94 : i32
    %222 = tpu.assume_multiple %221, 8 : i32
    %223 = arith.index_cast %222 : i32 to index
    %c0_95 = arith.constant 0 : index
    %224 = vector.load %arg14[%223, %c0_95] : memref<64x32xf32, #tpu.memory_space<vmem>>, vector<8x32xf32>
    %225 = arith.index_cast %222 : i32 to index
    %c0_96 = arith.constant 0 : index
    %226 = vector.load %arg15[%225, %c0_96] : memref<64x32xf32, #tpu.memory_space<vmem>>, vector<8x32xf32>
    %227 = arith.index_cast %222 : i32 to index
    %c0_97 = arith.constant 0 : index
    %228 = vector.load %arg16[%227, %c0_97] : memref<64x32xf32, #tpu.memory_space<vmem>>, vector<8x32xf32>
    %cst_98 = arith.constant dense<0.000000e+00> : vector<8x32xf32>
    %229 = tpu.matmul %214, %19, %cst_98 {dimension_numbers = #tpu.dot_dimension_numbers<[1], [0], [0], [1], [0, 0, 1, 1], [], []>} : vector<8x32xf32>, vector<32x32xf32>, vector<8x32xf32> -> vector<8x32xf32>
    %cst_99 = arith.constant dense<0.000000e+00> : vector<8x32xf32>
    %230 = tpu.matmul %214, %20, %cst_99 {dimension_numbers = #tpu.dot_dimension_numbers<[1], [0], [0], [1], [0, 0, 1, 1], [], []>} : vector<8x32xf32>, vector<32x32xf32>, vector<8x32xf32> -> vector<8x32xf32>
    %cst_100 = arith.constant dense<0.000000e+00> : vector<8x32xf32>
    %231 = tpu.matmul %214, %21, %cst_100 {dimension_numbers = #tpu.dot_dimension_numbers<[1], [0], [0], [1], [0, 0, 1, 1], [], []>} : vector<8x32xf32>, vector<32x32xf32>, vector<8x32xf32> -> vector<8x32xf32>
    %232 = arith.addf %231, %24 : vector<8x32xf32>
    %233 = arith.addf %224, %229 : vector<8x32xf32>
    %234 = arith.negf %233 : vector<8x32xf32>
    %235 = math.exp %234 : vector<8x32xf32>
    %cst_101 = arith.constant 1.000000e+00 : f32
    %236 = vector.broadcast %cst_101 : f32 to vector<8x32xf32>
    %237 = arith.addf %236, %235 : vector<8x32xf32>
    %238 = arith.divf %236, %237 : vector<8x32xf32>
    %239 = arith.addf %226, %230 : vector<8x32xf32>
    %240 = arith.negf %239 : vector<8x32xf32>
    %241 = math.exp %240 : vector<8x32xf32>
    %cst_102 = arith.constant 1.000000e+00 : f32
    %242 = vector.broadcast %cst_102 : f32 to vector<8x32xf32>
    %243 = arith.addf %242, %241 : vector<8x32xf32>
    %244 = arith.divf %242, %243 : vector<8x32xf32>
    %245 = arith.mulf %238, %232 : vector<8x32xf32>
    %246 = arith.addf %228, %245 : vector<8x32xf32>
    %247 = math.tanh %246 : vector<8x32xf32>
    %cst_103 = arith.constant 1.000000e+00 : f32
    %248 = vector.broadcast %cst_103 : f32 to vector<8x32xf32>
    %249 = arith.subf %248, %244 : vector<8x32xf32>
    %250 = arith.mulf %249, %247 : vector<8x32xf32>
    %251 = arith.mulf %244, %214 : vector<8x32xf32>
    %252 = arith.addf %250, %251 : vector<8x32xf32>
    %253 = math.exp %252 : vector<8x32xf32>
    %cst_104 = arith.constant dense<0.000000e+00> : vector<32x8xf32>
    %254 = tpu.matmul %29, %253, %cst_104 {dimension_numbers = #tpu.dot_dimension_numbers<[1], [1], [0], [0], [0, 0, 1, 0], [], []>} : vector<32x32xf32>, vector<8x32xf32>, vector<32x8xf32> -> vector<32x8xf32>
    %255 = arith.index_cast %c5_i32 : i32 to index
    %c0_105 = arith.constant 0 : index
    %c0_106 = arith.constant 0 : index
    %256 = vector.load %arg12[%255, %c0_105, %c0_106] : memref<8x32x8xf32, #tpu.memory_space<vmem>>, vector<1x32x8xf32>
    %257 = vector.shape_cast %256 : vector<1x32x8xf32> to vector<32x8xf32>
    %258 = vector.shape_cast %254 : vector<32x8xf32> to vector<1x32x8xf32>
    tpu.vector_store %arg12[%255, %c0_105, %c0_106], %258 {strides = array<i32>} : memref<8x32x8xf32, #tpu.memory_space<vmem>>, vector<1x32x8xf32>,
    %c6_i32 = arith.constant 6 : i32
    %c8_i32_107 = arith.constant 8 : i32
    %259 = arith.muli %c6_i32, %c8_i32_107 : i32
    %260 = tpu.assume_multiple %259, 8 : i32
    %261 = arith.index_cast %260 : i32 to index
    %c0_108 = arith.constant 0 : index
    %262 = vector.load %arg14[%261, %c0_108] : memref<64x32xf32, #tpu.memory_space<vmem>>, vector<8x32xf32>
    %263 = arith.index_cast %260 : i32 to index
    %c0_109 = arith.constant 0 : index
    %264 = vector.load %arg15[%263, %c0_109] : memref<64x32xf32, #tpu.memory_space<vmem>>, vector<8x32xf32>
    %265 = arith.index_cast %260 : i32 to index
    %c0_110 = arith.constant 0 : index
    %266 = vector.load %arg16[%265, %c0_110] : memref<64x32xf32, #tpu.memory_space<vmem>>, vector<8x32xf32>
    %cst_111 = arith.constant dense<0.000000e+00> : vector<8x32xf32>
    %267 = tpu.matmul %252, %19, %cst_111 {dimension_numbers = #tpu.dot_dimension_numbers<[1], [0], [0], [1], [0, 0, 1, 1], [], []>} : vector<8x32xf32>, vector<32x32xf32>, vector<8x32xf32> -> vector<8x32xf32>
    %cst_112 = arith.constant dense<0.000000e+00> : vector<8x32xf32>
    %268 = tpu.matmul %252, %20, %cst_112 {dimension_numbers = #tpu.dot_dimension_numbers<[1], [0], [0], [1], [0, 0, 1, 1], [], []>} : vector<8x32xf32>, vector<32x32xf32>, vector<8x32xf32> -> vector<8x32xf32>
    %cst_113 = arith.constant dense<0.000000e+00> : vector<8x32xf32>
    %269 = tpu.matmul %252, %21, %cst_113 {dimension_numbers = #tpu.dot_dimension_numbers<[1], [0], [0], [1], [0, 0, 1, 1], [], []>} : vector<8x32xf32>, vector<32x32xf32>, vector<8x32xf32> -> vector<8x32xf32>
    %270 = arith.addf %269, %24 : vector<8x32xf32>
    %271 = arith.addf %262, %267 : vector<8x32xf32>
    %272 = arith.negf %271 : vector<8x32xf32>
    %273 = math.exp %272 : vector<8x32xf32>
    %cst_114 = arith.constant 1.000000e+00 : f32
    %274 = vector.broadcast %cst_114 : f32 to vector<8x32xf32>
    %275 = arith.addf %274, %273 : vector<8x32xf32>
    %276 = arith.divf %274, %275 : vector<8x32xf32>
    %277 = arith.addf %264, %268 : vector<8x32xf32>
    %278 = arith.negf %277 : vector<8x32xf32>
    %279 = math.exp %278 : vector<8x32xf32>
    %cst_115 = arith.constant 1.000000e+00 : f32
    %280 = vector.broadcast %cst_115 : f32 to vector<8x32xf32>
    %281 = arith.addf %280, %279 : vector<8x32xf32>
    %282 = arith.divf %280, %281 : vector<8x32xf32>
    %283 = arith.mulf %276, %270 : vector<8x32xf32>
    %284 = arith.addf %266, %283 : vector<8x32xf32>
    %285 = math.tanh %284 : vector<8x32xf32>
    %cst_116 = arith.constant 1.000000e+00 : f32
    %286 = vector.broadcast %cst_116 : f32 to vector<8x32xf32>
    %287 = arith.subf %286, %282 : vector<8x32xf32>
    %288 = arith.mulf %287, %285 : vector<8x32xf32>
    %289 = arith.mulf %282, %252 : vector<8x32xf32>
    %290 = arith.addf %288, %289 : vector<8x32xf32>
    %291 = math.exp %290 : vector<8x32xf32>
    %cst_117 = arith.constant dense<0.000000e+00> : vector<32x8xf32>
    %292 = tpu.matmul %29, %291, %cst_117 {dimension_numbers = #tpu.dot_dimension_numbers<[1], [1], [0], [0], [0, 0, 1, 0], [], []>} : vector<32x32xf32>, vector<8x32xf32>, vector<32x8xf32> -> vector<32x8xf32>
    %293 = arith.index_cast %c6_i32 : i32 to index
    %c0_118 = arith.constant 0 : index
    %c0_119 = arith.constant 0 : index
    %294 = vector.load %arg12[%293, %c0_118, %c0_119] : memref<8x32x8xf32, #tpu.memory_space<vmem>>, vector<1x32x8xf32>
    %295 = vector.shape_cast %294 : vector<1x32x8xf32> to vector<32x8xf32>
    %296 = vector.shape_cast %292 : vector<32x8xf32> to vector<1x32x8xf32>
    tpu.vector_store %arg12[%293, %c0_118, %c0_119], %296 {strides = array<i32>} : memref<8x32x8xf32, #tpu.memory_space<vmem>>, vector<1x32x8xf32>,
    %c7_i32 = arith.constant 7 : i32
    %c8_i32_120 = arith.constant 8 : i32
    %297 = arith.muli %c7_i32, %c8_i32_120 : i32
    %298 = tpu.assume_multiple %297, 8 : i32
    %299 = arith.index_cast %298 : i32 to index
    %c0_121 = arith.constant 0 : index
    %300 = vector.load %arg14[%299, %c0_121] : memref<64x32xf32, #tpu.memory_space<vmem>>, vector<8x32xf32>
    %301 = arith.index_cast %298 : i32 to index
    %c0_122 = arith.constant 0 : index
    %302 = vector.load %arg15[%301, %c0_122] : memref<64x32xf32, #tpu.memory_space<vmem>>, vector<8x32xf32>
    %303 = arith.index_cast %298 : i32 to index
    %c0_123 = arith.constant 0 : index
    %304 = vector.load %arg16[%303, %c0_123] : memref<64x32xf32, #tpu.memory_space<vmem>>, vector<8x32xf32>
    %cst_124 = arith.constant dense<0.000000e+00> : vector<8x32xf32>
    %305 = tpu.matmul %290, %19, %cst_124 {dimension_numbers = #tpu.dot_dimension_numbers<[1], [0], [0], [1], [0, 0, 1, 1], [], []>} : vector<8x32xf32>, vector<32x32xf32>, vector<8x32xf32> -> vector<8x32xf32>
    %cst_125 = arith.constant dense<0.000000e+00> : vector<8x32xf32>
    %306 = tpu.matmul %290, %20, %cst_125 {dimension_numbers = #tpu.dot_dimension_numbers<[1], [0], [0], [1], [0, 0, 1, 1], [], []>} : vector<8x32xf32>, vector<32x32xf32>, vector<8x32xf32> -> vector<8x32xf32>
    %cst_126 = arith.constant dense<0.000000e+00> : vector<8x32xf32>
    %307 = tpu.matmul %290, %21, %cst_126 {dimension_numbers = #tpu.dot_dimension_numbers<[1], [0], [0], [1], [0, 0, 1, 1], [], []>} : vector<8x32xf32>, vector<32x32xf32>, vector<8x32xf32> -> vector<8x32xf32>
    %308 = arith.addf %307, %24 : vector<8x32xf32>
    %309 = arith.addf %300, %305 : vector<8x32xf32>
    %310 = arith.negf %309 : vector<8x32xf32>
    %311 = math.exp %310 : vector<8x32xf32>
    %cst_127 = arith.constant 1.000000e+00 : f32
    %312 = vector.broadcast %cst_127 : f32 to vector<8x32xf32>
    %313 = arith.addf %312, %311 : vector<8x32xf32>
    %314 = arith.divf %312, %313 : vector<8x32xf32>
    %315 = arith.addf %302, %306 : vector<8x32xf32>
    %316 = arith.negf %315 : vector<8x32xf32>
    %317 = math.exp %316 : vector<8x32xf32>
    %cst_128 = arith.constant 1.000000e+00 : f32
    %318 = vector.broadcast %cst_128 : f32 to vector<8x32xf32>
    %319 = arith.addf %318, %317 : vector<8x32xf32>
    %320 = arith.divf %318, %319 : vector<8x32xf32>
    %321 = arith.mulf %314, %308 : vector<8x32xf32>
    %322 = arith.addf %304, %321 : vector<8x32xf32>
    %323 = math.tanh %322 : vector<8x32xf32>
    %cst_129 = arith.constant 1.000000e+00 : f32
    %324 = vector.broadcast %cst_129 : f32 to vector<8x32xf32>
    %325 = arith.subf %324, %320 : vector<8x32xf32>
    %326 = arith.mulf %325, %323 : vector<8x32xf32>
    %327 = arith.mulf %320, %290 : vector<8x32xf32>
    %328 = arith.addf %326, %327 : vector<8x32xf32>
    %329 = math.exp %328 : vector<8x32xf32>
    %cst_130 = arith.constant dense<0.000000e+00> : vector<32x8xf32>
    %330 = tpu.matmul %29, %329, %cst_130 {dimension_numbers = #tpu.dot_dimension_numbers<[1], [1], [0], [0], [0, 0, 1, 0], [], []>} : vector<32x32xf32>, vector<8x32xf32>, vector<32x8xf32> -> vector<32x8xf32>
    %331 = arith.index_cast %c7_i32 : i32 to index
    %c0_131 = arith.constant 0 : index
    %c0_132 = arith.constant 0 : index
    %332 = vector.load %arg12[%331, %c0_131, %c0_132] : memref<8x32x8xf32, #tpu.memory_space<vmem>>, vector<1x32x8xf32>
    %333 = vector.shape_cast %332 : vector<1x32x8xf32> to vector<32x8xf32>
    %334 = vector.shape_cast %330 : vector<32x8xf32> to vector<1x32x8xf32>
    tpu.vector_store %arg12[%331, %c0_131, %c0_132], %334 {strides = array<i32>} : memref<8x32x8xf32, #tpu.memory_space<vmem>>, vector<1x32x8xf32>,
    %c8_i32_133 = arith.constant 8 : i32
    %c0_134 = arith.constant 0 : index
    %c0_135 = arith.constant 0 : index
    %c0_136 = arith.constant 0 : index
    %335 = vector.load %arg13[%c0_134, %c0_135, %c0_136] : memref<1x8x32xf32, #tpu.memory_space<vmem>>, vector<1x8x32xf32>
    %336 = vector.shape_cast %335 : vector<1x8x32xf32> to vector<8x32xf32>
    %337 = vector.shape_cast %328 : vector<8x32xf32> to vector<1x8x32xf32>
    tpu.vector_store %arg13[%c0_134, %c0_135, %c0_136], %337 {strides = array<i32>} : memref<1x8x32xf32, #tpu.memory_space<vmem>>, vector<1x8x32xf32>,
    return
  }
  func.func @transform_0(%arg0: i32) -> (i32, i32) {
    %c0_i32 = arith.constant 0 : i32
    %c0_i32_0 = arith.constant 0 : i32
    %c0_i32_1 = arith.constant 0 : i32
    return %c0_i32, %c0_i32_0 : i32, i32
  }
  func.func @transform_1(%arg0: i32) -> (i32, i32) {
    %c0_i32 = arith.constant 0 : i32
    %c0_i32_0 = arith.constant 0 : i32
    %c0_i32_1 = arith.constant 0 : i32
    return %c0_i32, %c0_i32_0 : i32, i32
  }
  func.func @transform_2(%arg0: i32) -> (i32, i32) {
    %c0_i32 = arith.constant 0 : i32
    %c0_i32_0 = arith.constant 0 : i32
    %c0_i32_1 = arith.constant 0 : i32
    return %c0_i32, %c0_i32_0 : i32, i32
  }
  func.func @transform_3(%arg0: i32) -> (i32, i32) {
    %c0_i32 = arith.constant 0 : i32
    %c0_i32_0 = arith.constant 0 : i32
    %c0_i32_1 = arith.constant 0 : i32
    return %c0_i32, %c0_i32_0 : i32, i32
  }
  func.func @transform_4(%arg0: i32) -> (i32, i32) {
    %c0_i32 = arith.constant 0 : i32
    %c0_i32_0 = arith.constant 0 : i32
    %c0_i32_1 = arith.constant 0 : i32
    return %c0_i32, %c0_i32_0 : i32, i32
  }
  func.func @transform_5(%arg0: i32) -> (i32, i32) {
    %c0_i32 = arith.constant 0 : i32
    %c0_i32_0 = arith.constant 0 : i32
    %c0_i32_1 = arith.constant 0 : i32
    return %c0_i32, %c0_i32_0 : i32, i32
  }
  func.func @transform_6(%arg0: i32) -> (i32, i32) {
    %c0_i32 = arith.constant 0 : i32
    %c0_i32_0 = arith.constant 0 : i32
    %c0_i32_1 = arith.constant 0 : i32
    return %c0_i32, %c0_i32_0 : i32, i32
  }
  func.func @transform_7(%arg0: i32) -> (i32, i32) {
    %c0_i32 = arith.constant 0 : i32
    %c0_i32_0 = arith.constant 0 : i32
    %c0_i32_1 = arith.constant 0 : i32
    return %c0_i32, %c0_i32_0 : i32, i32
  }
  func.func @transform_8(%arg0: i32) -> (i32, i32) {
    %c0_i32 = arith.constant 0 : i32
    %c0_i32_0 = arith.constant 0 : i32
    %c0_i32_1 = arith.constant 0 : i32
    return %c0_i32, %c0_i32_0 : i32, i32
  }
  func.func @transform_9(%arg0: i32) -> (i32, i32) {
    %c0_i32 = arith.constant 0 : i32
    %c0_i32_0 = arith.constant 0 : i32
    %c0_i32_1 = arith.constant 0 : i32
    return %c0_i32, %c0_i32_0 : i32, i32
  }
  func.func @transform_10(%arg0: i32) -> (i32, i32) {
    %c0_i32 = arith.constant 0 : i32
    %c0_i32_0 = arith.constant 0 : i32
    %c0_i32_1 = arith.constant 0 : i32
    return %c0_i32, %c0_i32_0 : i32, i32
  }
  func.func @transform_11(%arg0: i32) -> (i32, i32, i32) {
    %c0_i32 = arith.constant 0 : i32
    %c0_i32_0 = arith.constant 0 : i32
    %c0_i32_1 = arith.constant 0 : i32
    %c0_i32_2 = arith.constant 0 : i32
    return %c0_i32, %c0_i32_0, %c0_i32_1 : i32, i32, i32
  }
  func.func @transform_12(%arg0: i32) -> (i32, i32, i32) {
    %c0_i32 = arith.constant 0 : i32
    %c0_i32_0 = arith.constant 0 : i32
    %c0_i32_1 = arith.constant 0 : i32
    %c0_i32_2 = arith.constant 0 : i32
    return %c0_i32, %c0_i32_0, %c0_i32_1 : i32, i32, i32
  }
}

</mosaic_0001>

<bundles_post_ra>
// kernel: tpu_custom_call.1
= control target key start
LH: loop header
LB: loop body
LE: loop exit
PB: predicated region body
PF: predicated region fallthrough
CT: control target
= control target key end

     0   :  { %18 = vsyncpa [#allocation6], 0  ;;  %s5023_s0 = inlined_call_operand.vmem [shape: f32[64,16], index: 0, kind: input, shape index: {}]   ;;  %s5024_s1 = inlined_call_operand.hbm [shape: f32[16,32], index: 1, kind: input, shape index: {}]   ;;  %s5025_s2 = inlined_call_operand.hbm [shape: f32[16,32], index: 2, kind: input, shape index: {}]   ;;  %s5026_s3 = inlined_call_operand.hbm [shape: f32[16,32], index: 3, kind: input, shape index: {}]   ;;  %s5027_s4 = inlined_call_operand.vmem [shape: f32[32,32], index: 4, kind: input, shape index: {}]   ;;  %s5028_s5 = inlined_call_operand.vmem [shape: f32[32,32], index: 5, kind: input, shape index: {}]   ;;  %s5029_s6 = inlined_call_operand.vmem [shape: f32[32,32], index: 6, kind: input, shape index: {}]   ;;  %s5030_s7 = inlined_call_operand.vmem [shape: f32[1,32], index: 7, kind: input, shape index: {}]   ;;  %s5031_s8 = inlined_call_operand.vmem [shape: f32[1,32], index: 8, kind: input, shape index: {}]   ;;  %s5032_s9 = inlined_call_operand.vmem [shape: f32[1,32], index: 9, kind: input, shape index: {}]   ;;  %s5033_s10 = inlined_call_operand.vmem [shape: f32[1,32], index: 10, kind: input, shape index: {}]   ;;  %s5034_s11 = inlined_call_operand.vmem [shape: f32[8,32,8], index: 11, kind: output, shape index: {0}]   ;;  %s5035_s12 = inlined_call_operand.hbm [shape: f32[1,8,32], index: 12, kind: output, shape index: {1}]  }
   0x1   :  { %19 = vsyncpa [#allocation9], 0 }
   0x2   :  { %20 = vsyncpa [#allocation7], 0  ;;  %s4288_s21 = smov [#allocation8]   ;;  %s4289_s23 = smov [#allocation5]  }
   0x3   :  { %s40_s22 = sshll.u32 %s4288_s21, 4  ;;  %s28_s24 = sshll.u32 %s4289_s23, 4  ;;  %s41_s22 = int_to_ptr.vmem [resolvable:$true] %s40_s22  ;;  %s4362_s24 = int_to_ptr.vmem [resolvable:$true] %s28_s24 }
   0x4   :  { %s4194_s27 = scalar_lea.hbm %s5025_s2, 256 }
   0x5   :  { %p4195_p0 = scmp.ne.s32.totalorder %s5025_s2, %s4194_s27  ;;  %p4198_p1 = scmp.lt.u32.totalorder %s4194_s27, %s5025_s2 }
   0x7   :  { %p4200_p2 = pnand %p4198_p1, %p4195_p0 }
   0x9   :  { %4203 = shalt.err (!%p4200_p2)
}
   0xa   :  { %s4204_s14 = scalar_lea.vmem %s41_s22, 256  ;;  %p4209_p4 = scmp.lt.s32.totalorder %s41_s22, %s41_s22 }
   0xb   :  { %p4205_p3 = scmp.ne.s32.totalorder %s41_s22, %s4204_s14  ;;  %p4210_p5 = scmp.lt.s32.totalorder %s4204_s14, %s4204_s14 }
   0xd   :  { %p4211_p6 = por %p4210_p5, %p4209_p4 }
   0xf   :  { %p4212_p7 = pnand %p4211_p6, %p4205_p3 }
  0x11   :  { %4215 = shalt.err (!%p4212_p7)
}
  0x12   :  { %s4290_s15 = smov 128   ;;  %s4291_s16 = smov 8  }
  0x13   :  { %46 = dma.hbm_to_vmem [thread:$0]  %s5025_s2, 256, %s41_s22, [#allocation9], %s4290_s15, %s4290_s15, %s4291_s16  }
  0x14   :  { %s4216_s21 = scalar_lea.hbm %s5024_s1, 256 }
  0x15   :  { %p4217_p8 = scmp.ne.s32.totalorder %s5024_s1, %s4216_s21  ;;  %p4220_p9 = scmp.lt.u32.totalorder %s4216_s21, %s5024_s1 }
  0x17   :  { %p4222_p10 = pnand %p4220_p9, %p4217_p8 }
  0x19   :  { %4225 = shalt.err (!%p4222_p10)
}
  0x1a   :  { %s4226_s28 = scalar_lea.vmem %s4362_s24, 256  ;;  %p4231_p12 = scmp.lt.s32.totalorder %s4362_s24, %s4362_s24 }
  0x1b   :  { %p4227_p11 = scmp.ne.s32.totalorder %s4362_s24, %s4226_s28  ;;  %p4232_p13 = scmp.lt.s32.totalorder %s4226_s28, %s4226_s28 }
  0x1d   :  { %p4233_p0 = por %p4232_p13, %p4231_p12 }
  0x1f   :  { %p4234_p1 = pnand %p4233_p0, %p4227_p11 }
  0x21   :  { %4237 = shalt.err (!%p4234_p1)
}
  0x22   :  { %34 = dma.hbm_to_vmem [thread:$0]  %s5024_s1, 256, %s4362_s24, [#allocation6], %s4290_s15, %s4290_s15, %s4291_s16  }
  0x23   :  { %s4292_s29 = smov [#allocation10]   ;;  %s4238_s17 = scalar_lea.hbm %s5026_s3, 256 }
  0x24   :  { %s52_s30 = sshll.u32 %s4292_s29, 4  ;;  %p4239_p2 = scmp.ne.s32.totalorder %s5026_s3, %s4238_s17  ;;  %s53_s30 = int_to_ptr.vmem [resolvable:$true] %s52_s30 }
  0x25   :  { %p4242_p3 = scmp.lt.u32.totalorder %s4238_s17, %s5026_s3 }
  0x27   :  { %p4244_p4 = pnand %p4242_p3, %p4239_p2 }
  0x29   :  { %4247 = shalt.err (!%p4244_p4)
}
  0x2a   :  { %s4248_s23 = scalar_lea.vmem %s53_s30, 256  ;;  %p4253_p6 = scmp.lt.s32.totalorder %s53_s30, %s53_s30 }
  0x2b   :  { %p4249_p5 = scmp.ne.s32.totalorder %s53_s30, %s4248_s23  ;;  %p4254_p7 = scmp.lt.s32.totalorder %s4248_s23, %s4248_s23 }
  0x2d   :  { %p4255_p8 = por %p4254_p7, %p4253_p6 }
  0x2f   :  { %p4256_p9 = pnand %p4255_p8, %p4249_p5 }
  0x31   :  { %4259 = shalt.err (!%p4256_p9)
}
  0x32   :  { %58 = dma.hbm_to_vmem [thread:$0]  %s5026_s3, 256, %s53_s30, [#allocation9], %s4290_s15, %s4290_s15, %s4291_s16  }
  0x33   :  { %4282 = dma.done.wait [#allocation6], 256  }
  0x34   :  { %4283 = vsyncadd [#allocation6], 4294967040 }
  0x35   :  { %4284 = dma.done.wait [#allocation9], 512  }
  0x36   :  { %4285 = vsyncadd [#allocation9], 4294966784  ;;  %vm99_vm0 = vcmask 130048   ;;  %v238_v0 = vld [vmem:[#allocation8] sm:$0xff]  ;;  %v239_v1 = vld [vmem:[#allocation8 + $0x8] sm:$0xff]  ;;  %v4293_v13 = vmov 0.0|0.0   ;;  %v501_v37 = vlaneseq }
  0x37   :  { %v82_v2 = vld [vmem:[%s5023_s0] sm:$0xff]  ;;  %v3937_v3 = vpack.c.bf16 %v239_v1, %v238_v0  ;;  %v91_v5 = vld [vmem:[#allocation5 + $0x8] sm:$0xff]  ;;  %v84_v11 = vld [vmem:[%s5023_s0 + $0x10] sm:$0xff]  ;;  %vm4294_vm1 = vmmov 0   ;;  %v4295_v28 = vmov 0.0   ;;  %vm229_vm3 = vcmask 261120  }
  0x38   :  { %3577 = vmatprep.mubr.msk.f32.mxu1 %vm99_vm0, %v82_v2  ;;  %v90_v4 = vld [vmem:[#allocation5] sm:$0xff]  ;;  %3561 = vmatprep.mubr.msk.f32.mxu0 %vm99_vm0, %v82_v2  ;;  %v483_v8 = vld [vmem:[%s5027_s4 + $0x8] sm:$0xff]  ;;  %v484_v14 = vld [vmem:[%s5027_s4 + $0x10] sm:$0xff]  ;;  %v502_v38 = vshrl.u32 %v501_v37, 7  ;;  %v4537_v39 = vand.u32 127, %v501_v37  ;;  %vm859_vm7 = vcmask 64512  }
  0x39   :  { %v3933_v6 = vpack.c.bf16 %v91_v5, %v90_v4  ;;  %v482_v7 = vld [vmem:[%s5027_s4] sm:$0xff]  ;;  %3938 = vmatprep.subr.bf16.mxu1 %v3937_v3  ;;  %v83_v9 = vld [vmem:[%s5023_s0 + $0x8] sm:$0xff]  ;;  %v485_v15 = vld [vmem:[%s5027_s4 + $0x18] sm:$0xff] }
  0x3a   :  { %3940 = vmatpush3.bf16.msra.mxu1 %v3937_v3  ;;  %v4428_v10 = vpack.c.bf16 %v483_v8, %v482_v7  ;;  %v360_v12 = vld [vmem:[#allocation10] sm:$0xff]  ;;  %v361_v16 = vld [vmem:[#allocation10 + $0x8] sm:$0xff]  ;;  %v85_v18 = vld [vmem:[%s5023_s0 + $0x18] sm:$0xff]  ;;  %v4446_v19 = vpack.c.bf16 %v485_v15, %v484_v14  ;;  %v4539_v40 = vadd.s32 8, %v502_v38  ;;  %vm508_vm2 = vcmp.eq.s32.totalorder %v502_v38, %v4537_v39 }
  0x3b   :  { %3934 = vmatprep.subr.bf16.mxu0 %v3933_v6  ;;  %3945 = vmatprep.subr.bf16.mxu1 %v4293_v13  ;;  %v3941_v17 = vpack.c.bf16 %v361_v16, %v360_v12  ;;  %v86_v20 = vld [vmem:[%s5023_s0 + $0x20] sm:$0xff]  ;;  %v87_v21 = vld [vmem:[%s5023_s0 + $0x28] sm:$0xff]  ;;  %v88_v22 = vld [vmem:[%s5023_s0 + $0x30] sm:$0xff]  ;;  %v4543_v41 = vsel %vm508_vm2, 1.0, %v4295_v28  ;;  %v4549_v42 = vadd.s32 16, %v502_v38  ;;  %v4551_v43 = vadd.s32 24, %v502_v38 }
  0x3c   :  { %3936 = vmatpush3.bf16.msra.mxu0 %v3933_v6  ;;  %v89_v23 = vld [vmem:[%s5023_s0 + $0x38] sm:$0xff]  ;;  %v486_v24 = vld [vmem:[%s5028_s5] sm:$0xff]  ;;  %v487_v25 = vld [vmem:[%s5028_s5 + $0x8] sm:$0xff]  ;;  %vm509_vm4 = vcmp.eq.s32.totalorder %v4539_v40, %v4537_v39 }
  0x3d   :  { %3578 = vmatmul.mubr.msk.f32.vlgmr.msra.gmra.mrb[0].mxu1 %vm99_vm0, %v83_v9  ;;  %3942 = vmatprep.subr.bf16.mxu0 %v3941_v17  ;;  %v490_v26 = vld [vmem:[%s5029_s6] sm:$0xff]  ;;  %v491_v27 = vld [vmem:[%s5029_s6 + $0x8] sm:$0xff]  ;;  %v4489_v29 = vpack.c.bf16 %v487_v25, %v486_v24  ;;  %v488_v30 = vld [vmem:[%s5028_s5 + $0x10] sm:$0xff]  ;;  %vm510_vm5 = vcmp.eq.s32.totalorder %v4549_v42, %v4537_v39  ;;  %vm511_vm6 = vcmp.eq.s32.totalorder %v4551_v43, %v4537_v39 }
  0x3e   :  { %3947 = vmatpush3.bf16.msra.mxu1 %v4428_v10  ;;  %3580 = vmatprep.mubr.msk.f32.mxu1 %vm99_vm0, %v84_v11  ;;  %v489_v31 = vld [vmem:[%s5028_s5 + $0x18] sm:$0xff]  ;;  %v4499_v32 = vpack.c.bf16 %v491_v27, %v490_v26  ;;  %v492_v33 = vld [vmem:[%s5029_s6 + $0x10] sm:$0xff]  ;;  %v3239_v44 = vld [vmem:[%s5031_s8] ss:$0 sm:$0xff]  ;;  %v4627_v40 = vsel %vm511_vm6, 1.0, %v4295_v28 }
  0x3f   :  { %3562 = vmatmul.mubr.msk.f32.vlgmr.msra.gmra.mrb[0].mxu0 %vm99_vm0, %v83_v9  ;;  %3948 = vmatprep.subr.bf16.mxu1 %v4293_v13  ;;  %v493_v34 = vld [vmem:[%s5029_s6 + $0x18] sm:$0xff]  ;;  %v4509_v35 = vpack.c.bf16 %v489_v31, %v488_v30  ;;  %v3230_v46 = vld [vmem:[%s5030_s7] ss:$0 sm:$0xff] }
  0x40   :  { %3564 = vmatprep.mubr.msk.f32.mxu0 %vm99_vm0, %v84_v11  ;;  %3944 = vmatpush3.bf16.msra.mxu0 %v3941_v17  ;;  %v4517_v36 = vpack.c.bf16 %v493_v34, %v492_v33 }
  0x41   :  { %3581 = vmatmul.mubr.msk.f32.gmra.mrb[2].mxu1 %vm99_vm0, %v85_v18  ;;  %3957 = vmatprep.subr.bf16.mxu0 %v4293_v13 }
  0x42   :  { %3583 = vmatprep.mubr.msk.f32.mxu1 %vm99_vm0, %v86_v20  ;;  %3950 = vmatpush3.bf16.msra.mxu1 %v4446_v19 }
  0x43   :  { %3565 = vmatmul.mubr.msk.f32.gmra.mrb[2].mxu0 %vm99_vm0, %v85_v18  ;;  %3951 = vmatprep.subr.bf16.mxu1 %v4293_v13 }
  0x44   :  { %3567 = vmatprep.mubr.msk.f32.mxu0 %vm99_vm0, %v86_v20 }
  0x45   :  { %3584 = vmatmul.mubr.msk.f32.gmra.mrb[4].mxu1 %vm99_vm0, %v87_v21 }
  0x46   :  { %3586 = vmatprep.mubr.msk.f32.mxu1 %vm99_vm0, %v88_v22 }
  0x47   :  { %3568 = vmatmul.mubr.msk.f32.gmra.mrb[4].mxu0 %vm99_vm0, %v87_v21 }
  0x48   :  { %3570 = vmatprep.mubr.msk.f32.mxu0 %vm99_vm0, %v88_v22 }
  0x49   :  { %3587 = vmatmul.mubr.msk.f32.gmra.mrb[6].mxu1 %vm99_vm0, %v89_v23 }
  0x4a   :  { %3613 = vmatprep.mubr.msk.f32.mxu1 %vm4294_vm1, %v4295_v28 }
  0x4b   :  { %3571 = vmatmul.mubr.msk.f32.gmra.mrb[6].mxu0 %vm99_vm0, %v89_v23 }
  0x4c   :  { %3593 = vmatprep.mubr.msk.f32.mxu0 %vm99_vm0, %v82_v2 }
  0x4d   :  { %3614 = vmatmul.mubr.f32.vlgmr.msra.gmra.mrb[8].mxu1 %v4295_v28 }
  0x4e   :  { %3953 = vmatpush3.bf16.msra.mxu1 %v4489_v29  ;;  %3624 = vmatprep.mubr.msk.f32.mxu1 %vm4294_vm1, %v4295_v28 }
  0x4f   :  { %3954 = vmatprep.subr.bf16.mxu1 %v4293_v13  ;;  %3594 = vmatmul.mubr.msk.f32.vlgmr.msra.gmra.mrb[8].mxu0 %vm99_vm0, %v83_v9 }
  0x50   :  { %3959 = vmatpush3.bf16.msra.mxu0 %v4499_v32  ;;  %3596 = vmatprep.mubr.msk.f32.mxu0 %vm99_vm0, %v84_v11 }
  0x51   :  { %3960 = vmatprep.subr.bf16.mxu0 %v4293_v13 }
  0x52   :  { %3956 = vmatpush3.bf16.msra.mxu1 %v4509_v35 }
  0x53   :  { %3597 = vmatmul.mubr.msk.f32.gmra.mrb[10].mxu0 %vm99_vm0, %v85_v18  ;;  %v3248_v18 = vld [vmem:[%s5032_s9] ss:$0 sm:$0xff]  ;;  %s4296_s9 = smov [#allocation11]  }
  0x54   :  { %3599 = vmatprep.mubr.msk.f32.mxu0 %vm99_vm0, %v86_v20  ;;  %3962 = vmatpush3.bf16.msra.mxu0 %v4517_v36  ;;  %s3218_s23 = sshll.u32 %s4296_s9, 4  ;;  %s3219_s23 = int_to_ptr.vmem [resolvable:$true] %s3218_s23 }
  0x55   :  { %3625 = vmatmul.mubr.f32.vlgmr.msra.gmra.mrb[10].mxu1 %v4295_v28  ;;  %3969 = vmatprep.subr.bf16.mxu0 %v4293_v13  ;;  %p4265_p11 = scmp.lt.s32.totalorder %s3219_s23, %s3219_s23 }
  0x56   :  { %3640 = vmatprep.mubr.msk.f32.mxu1 %vm229_vm3, %v4543_v41 }
  0x57   :  { %3600 = vmatmul.mubr.msk.f32.gmra.mrb[12].mxu0 %vm99_vm0, %v87_v21 }
  0x58   :  { %3602 = vmatprep.mubr.msk.f32.mxu0 %vm99_vm0, %v88_v22 }
  0x5b   :  { %3603 = vmatmul.mubr.msk.f32.gmra.mrb[14].mxu0 %vm99_vm0, %v89_v23 }
  0x5c   :  { %3635 = vmatprep.mubr.msk.f32.mxu0 %vm4294_vm1, %v4295_v28 }
  0x5f   :  { %3636 = vmatmul.mubr.f32.vlgmr.msra.gmra.mrb[16].mxu0 %v4295_v28 }
  0x60   :  { %3971 = vmatpush3.bf16.msra.mxu0 %v4489_v29  ;;  %3665 = vmatprep.mubr.msk.f32.mxu0 %vm4294_vm1, %v4295_v28 }
  0x61   :  { %3972 = vmatprep.subr.bf16.mxu0 %v4293_v13 }
  0x64   :  { %3974 = vmatpush3.bf16.msra.mxu0 %v4509_v35 }
 0x110   :  { %v3579_v45 = vpop.f32.mrb[0].mxu1 }
 0x111   :  { %v319_v47 = vadd.f32 %v3579_v45, %v3239_v44  ;;  %v313_v48 = vpop.f32.mrb[1].mxu1 }
 0x112   :  { %v314_v49 = vadd.f32 %v3239_v44, %v313_v48  ;;  %v3563_v50 = vpop.f32.mrb[0].mxu0 }
 0x113   :  { %353 = vst.msk [vmem:[#allocation3 + $0x8] sm:$0xff] %vm229_vm3, %v319_v47  ;;  %v196_v51 = vadd.f32 %v3563_v50, %v3230_v46  ;;  %v190_v52 = vpop.f32.mrb[1].mxu0 }
 0x114   :  { %352 = vst.msk [vmem:[#allocation3] sm:$0xff] %vm229_vm3, %v314_v49  ;;  %v3582_v53 = vpop.f32.mrb[2].mxu1  ;;  %v191_v54 = vadd.f32 %v3230_v46, %v190_v52 }
 0x115   :  { %231 = vst.msk [vmem:[#allocation2 + $0x8] sm:$0xff] %vm229_vm3, %v196_v51  ;;  %v329_v55 = vadd.f32 %v3582_v53, %v3239_v44  ;;  %v323_v56 = vpop.f32.mrb[3].mxu1 }
 0x116   :  { %230 = vst.msk [vmem:[#allocation2] sm:$0xff] %vm229_vm3, %v191_v54  ;;  %v324_v57 = vadd.f32 %v3239_v44, %v323_v56  ;;  %v3566_v58 = vpop.f32.mrb[2].mxu0 }
 0x117   :  { %355 = vst.msk [vmem:[#allocation3 + $0x18] sm:$0xff] %vm229_vm3, %v329_v55  ;;  %v206_v59 = vadd.f32 %v3566_v58, %v3230_v46  ;;  %v200_v60 = vpop.f32.mrb[3].mxu0  ;;  %v4593_v58 = vld [vmem:[%s5033_s10] ss:$0 sm:$0xff]  ;;  %s4260_s10 = scalar_lea.vmem %s3219_s23, 128 }
 0x118   :  { %354 = vst.msk [vmem:[#allocation3 + $0x10] sm:$0xff] %vm229_vm3, %v324_v57  ;;  %v3585_v61 = vpop.f32.mrb[4].mxu1  ;;  %v201_v62 = vadd.f32 %v3230_v46, %v200_v60  ;;  %p4261_p10 = scmp.ne.s32.totalorder %s3219_s23, %s4260_s10  ;;  %p4266_p12 = scmp.lt.s32.totalorder %s4260_s10, %s4260_s10 }
 0x119   :  { %v339_v63 = vadd.f32 %v3585_v61, %v3239_v44  ;;  %v333_v0 = vpop.f32.mrb[5].mxu1  ;;  %233 = vst.msk [vmem:[#allocation2 + $0x18] sm:$0xff] %vm229_vm3, %v206_v59 }
 0x11a   :  { %v334_v1 = vadd.f32 %v3239_v44, %v333_v0  ;;  %232 = vst.msk [vmem:[#allocation2 + $0x10] sm:$0xff] %vm229_vm3, %v201_v62  ;;  %v3569_v2 = vpop.f32.mrb[4].mxu0  ;;  %p4267_p13 = por %p4266_p12, %p4265_p11 }
 0x11b   :  { %357 = vst.msk [vmem:[#allocation3 + $0x28] sm:$0xff] %vm229_vm3, %v339_v63  ;;  %v216_v3 = vadd.f32 %v3569_v2, %v3230_v46  ;;  %v210_v4 = vpop.f32.mrb[5].mxu0  ;;  %v521_v33 = vld [vmem:[#allocation3] sm:$0xff] }
 0x11c   :  { %356 = vst.msk [vmem:[#allocation3 + $0x20] sm:$0xff] %vm229_vm3, %v334_v1  ;;  %v3588_v5 = vpop.f32.mrb[6].mxu1  ;;  %v211_v6 = vadd.f32 %v3230_v46, %v210_v4  ;;  %p4268_p0 = pnand %p4267_p13, %p4261_p10 }
 0x11d   :  { %v349_v7 = vadd.f32 %v3588_v5, %v3239_v44  ;;  %v343_v8 = vpop.f32.mrb[7].mxu1  ;;  %235 = vst.msk [vmem:[#allocation2 + $0x28] sm:$0xff] %vm229_vm3, %v216_v3  ;;  %v520_v11 = vld [vmem:[#allocation2] sm:$0xff] }
 0x11e   :  { %v344_v9 = vadd.f32 %v3239_v44, %v343_v8  ;;  %234 = vst.msk [vmem:[#allocation2 + $0x20] sm:$0xff] %vm229_vm3, %v211_v6  ;;  %v3572_v12 = vpop.f32.mrb[6].mxu0 }
 0x11f   :  { %359 = vst.msk [vmem:[#allocation3 + $0x38] sm:$0xff] %vm229_vm3, %v349_v7  ;;  %v226_v14 = vadd.f32 %v3572_v12, %v3230_v46  ;;  %v220_v15 = vpop.f32.mrb[7].mxu0  ;;  %v4616_v12 = vsel %vm510_vm5, 1.0, %v4295_v28 }
 0x120   :  { %358 = vst.msk [vmem:[#allocation3 + $0x30] sm:$0xff] %vm229_vm3, %v344_v9  ;;  %v592_v16 = vpop.f32.mrb[8].mxu1  ;;  %v221_v17 = vadd.f32 %v3230_v46, %v220_v15 }
 0x121   :  { %v736_v20 = vadd.f32 %v592_v16, %v520_v11  ;;  %v3615_v21 = vpop.f32.mrb[9].mxu1  ;;  %237 = vst.msk [vmem:[#allocation2 + $0x38] sm:$0xff] %vm229_vm3, %v226_v14  ;;  %v4609_v11 = vsel %vm509_vm4, 1.0, %v4295_v28 }
 0x122   :  { %236 = vst.msk [vmem:[#allocation2 + $0x30] sm:$0xff] %vm229_vm3, %v221_v17  ;;  %v3595_v22 = vpop.f32.mrb[8].mxu0  ;;  %v865_v17 = vld [vmem:[#allocation2 + $0x8] sm:$0xff] }
 0x123   :  { %v3262_v23 = vmul.f32 -1.442695, %v736_v20  ;;  %v441_v24 = vadd.f32 %v3595_v22, %v3248_v18  ;;  %v435_v25 = vpop.f32.mrb[9].mxu0  ;;  %v867_v22 = vld [vmem:[#allocation3 + $0x8] sm:$0xff] }
 0x124   :  { %v436_v26 = vadd.f32 %v3248_v18, %v435_v25 }
 0x125   :  { %4098 = vpow2.f32 %v3262_v23  ;;  %475 = vst.msk [vmem:[#allocation4 + $0x8] sm:$0xff] %vm229_vm3, %v441_v24 }
 0x126   :  { %474 = vst.msk [vmem:[#allocation4] sm:$0xff] %vm229_vm3, %v436_v26  ;;  %v3598_v27 = vpop.f32.mrb[10].mxu0 }
 0x127   :  { %v451_v30 = vadd.f32 %v3598_v27, %v3248_v18  ;;  %v445_v31 = vpop.f32.mrb[11].mxu0 }
 0x128   :  { %v662_v34 = vpop.f32.mrb[10].mxu1  ;;  %v446_v37 = vadd.f32 %v3248_v18, %v445_v31 }
 0x129   :  { %v743_v38 = vadd.f32 %v662_v34, %v521_v33  ;;  %477 = vst.msk [vmem:[#allocation4 + $0x18] sm:$0xff] %vm229_vm3, %v451_v30  ;;  %v3626_v44 = vpop.f32.mrb[11].mxu1 }
 0x12a   :  { %476 = vst.msk [vmem:[#allocation4 + $0x10] sm:$0xff] %vm229_vm3, %v446_v37  ;;  %v3601_v45 = vpop.f32.mrb[12].mxu0 }
 0x12b   :  { %v3263_v46 = vmul.f32 -1.442695, %v743_v38  ;;  %v461_v47 = vadd.f32 %v3601_v45, %v3248_v18  ;;  %v455_v48 = vpop.f32.mrb[13].mxu0 }
 0x12c   :  { %v456_v49 = vadd.f32 %v3248_v18, %v455_v48  ;;  %v869_v45 = vld [vmem:[#allocation4 + $0x8] sm:$0xff] }
 0x12d   :  { %4100 = vpow2.f32 %v3263_v46  ;;  %479 = vst.msk [vmem:[#allocation4 + $0x28] sm:$0xff] %vm229_vm3, %v461_v47  ;;  %v522_v0 = vld [vmem:[#allocation4] sm:$0xff] }
 0x12e   :  { %478 = vst.msk [vmem:[#allocation4 + $0x20] sm:$0xff] %vm229_vm3, %v456_v49  ;;  %v3604_v50 = vpop.f32.mrb[14].mxu0 }
 0x12f   :  { %v4099_v51 = vpop.eup %4098  ;;  %v471_v52 = vadd.f32 %v3604_v50, %v3248_v18  ;;  %v465_v53 = vpop.f32.mrb[15].mxu0 }
 0x130   :  { %v740_v54 = vadd.f32 1.0, %v4099_v51  ;;  %v466_v55 = vadd.f32 %v3248_v18, %v465_v53 }
 0x131   :  { %481 = vst.msk [vmem:[#allocation4 + $0x38] sm:$0xff] %vm229_vm3, %v471_v52 }
 0x132   :  { %4102 = vrcp.f32 %v740_v54  ;;  %480 = vst.msk [vmem:[#allocation4 + $0x30] sm:$0xff] %vm229_vm3, %v466_v55  ;;  %v732_v56 = vpop.f32.mrb[16].mxu0 }
 0x133   :  { %v3637_v57 = vpop.f32.mrb[17].mxu0  ;;  %v733_v61 = vadd.f32 %v4593_v58, %v732_v56 }
 0x137   :  { %v4101_v59 = vpop.eup %4100 }
 0x138   :  { %v747_v60 = vadd.f32 1.0, %v4101_v59 }
 0x13a   :  { %4104 = vrcp.f32 %v747_v60 }
 0x13c   :  { %v4103_v62 = vpop.eup %4102 }
 0x13d   :  { %v750_v63 = vmul.f32 %v4103_v62, %v733_v61  ;;  %v1200_v62 = vld [vmem:[#allocation2 + $0x10] sm:$0xff] }
 0x13f   :  { %v751_v1 = vadd.f32 %v750_v63, %v522_v0 }
 0x141   :  { %4106 = vtanh.f32 %v751_v1 }
 0x144   :  { %v4105_v2 = vpop.eup %4104 }
 0x145   :  { %v753_v3 = vsub.f32 1.0, %v4105_v2  ;;  %v755_v6 = vmul.f32 0.0, %v4105_v2  ;;  %v1202_v2 = vld [vmem:[#allocation3 + $0x10] sm:$0xff] }
 0x14b   :  { %v4107_v4 = vpop.eup %4106 }
 0x14c   :  { %v754_v5 = vmul.f32 %v4107_v4, %v753_v3 }
 0x14e   :  { %v4596_v7 = vadd.f32 %v755_v6, %v754_v5 }
 0x150   :  { %v757_v8 = vmul.f32 1.442695, %v4596_v7  ;;  %3666 = vmatmul.mubr.msk.f32.vlgmr.msra.gmra.mrb[18].mxu0 %vm229_vm3, %v4596_v7 }
 0x151   :  { %3681 = vmatprep.mubr.msk.f32.mxu0 %vm229_vm3, %v4543_v41 }
 0x152   :  { %4108 = vpow2.f32 %v757_v8 }
 0x15c   :  { %v4109_v9 = vpop.eup %4108 }
 0x15d   :  { %3638 = vmatprep.subr.msk.mxu1 %vm229_vm3, %v4109_v9 }
 0x15e   :  { %3639 = vmatpush3.xpose.msk.msra.mxu1 %vm229_vm3, %v4109_v9 }
 0x15f   :  { %3963 = vmatprep.subr.bf16.mxu1 %v4293_v13 }
 0x161   :  { %3641 = vmatmul.mubr.msk.f32.vlgmr.msra.gmra.mrb[12].mxu1 %vm229_vm3, %v4609_v11 }
 0x162   :  { %3965 = vmatpush3.bf16.msra.mxu1 %v4428_v10  ;;  %3643 = vmatprep.mubr.msk.f32.mxu1 %vm229_vm3, %v4616_v12 }
 0x163   :  { %3966 = vmatprep.subr.bf16.mxu1 %v4293_v13 }
 0x165   :  { %3644 = vmatmul.mubr.msk.f32.gmra.mrb[14].mxu1 %vm229_vm3, %v4627_v40 }
 0x166   :  { %3968 = vmatpush3.bf16.msra.mxu1 %v4446_v19  ;;  %3654 = vmatprep.mubr.msk.f32.mxu1 %vm4294_vm1, %v4295_v28 }
 0x167   :  { %3975 = vmatprep.subr.bf16.mxu1 %v4293_v13 }
 0x169   :  { %3655 = vmatmul.mubr.msk.f32.vlgmr.msra.gmra.mrb[16].mxu1 %vm229_vm3, %v4596_v7 }
 0x16a   :  { %3977 = vmatpush3.bf16.msra.mxu1 %v4499_v32  ;;  %3676 = vmatprep.mubr.msk.f32.mxu1 %vm4294_vm1, %v4295_v28 }
 0x16b   :  { %3978 = vmatprep.subr.bf16.mxu1 %v4293_v13 }
 0x16e   :  { %3980 = vmatpush3.bf16.msra.mxu1 %v4517_v36 }
 0x16f   :  { %3987 = vmatprep.subr.bf16.mxu1 %v4293_v13 }
 0x171   :  { %3677 = vmatmul.mubr.msk.f32.vlgmr.msra.gmra.mrb[18].mxu1 %vm229_vm3, %v4596_v7 }
 0x172   :  { %3989 = vmatpush3.bf16.msra.mxu1 %v4489_v29  ;;  %3706 = vmatprep.mubr.msk.f32.mxu1 %vm4294_vm1, %v4295_v28 }
 0x173   :  { %3990 = vmatprep.subr.bf16.mxu1 %v4293_v13 }
 0x176   :  { %3992 = vmatpush3.bf16.msra.mxu1 %v4509_v35 }
 0x223   :  { %v1009_v39 = vpop.f32.mrb[18].mxu0 }
 0x224   :  { %v3667_v42 = vpop.f32.mrb[19].mxu0  ;;  %v1090_v24 = vadd.f32 %v1009_v39, %v867_v22 }
 0x226   :  { %v3273_v25 = vmul.f32 -1.442695, %v1090_v24 }
 0x234   :  { %v3642_v43 = vpop.f32.mrb[12].mxu1 }
 0x235   :  { %861 = vst.msk [vmem:[%s5034_s11 + $0x8] sm:$0xff] %vm859_vm7, %v3642_v43  ;;  %v840_v14 = vpop.f32.mrb[13].mxu1 }
 0x236   :  { %860 = vst.msk [vmem:[%s5034_s11] sm:$0xff] %vm859_vm7, %v840_v14 }
 0x238   :  { %v3645_v15 = vpop.f32.mrb[14].mxu1 }
 0x239   :  { %863 = vst.msk [vmem:[%s5034_s11 + $0x18] sm:$0xff] %vm859_vm7, %v3645_v15  ;;  %v850_v16 = vpop.f32.mrb[15].mxu1 }
 0x23a   :  { %862 = vst.msk [vmem:[%s5034_s11 + $0x10] sm:$0xff] %vm859_vm7, %v850_v16  ;;  %v1204_v16 = vld [vmem:[#allocation4 + $0x10] sm:$0xff] }
 0x23c   :  { %v939_v18 = vpop.f32.mrb[16].mxu1 }
 0x23d   :  { %v1083_v20 = vadd.f32 %v939_v18, %v865_v17  ;;  %v3656_v21 = vpop.f32.mrb[17].mxu1 }
 0x23f   :  { %v3272_v23 = vmul.f32 -1.442695, %v1083_v20 }
 0x241   :  { %4110 = vpow2.f32 %v3272_v23 }
 0x242   :  { %4112 = vpow2.f32 %v3273_v25 }
 0x244   :  { %v1079_v26 = vpop.f32.mrb[18].mxu1 }
 0x245   :  { %v3678_v27 = vpop.f32.mrb[19].mxu1  ;;  %v1080_v37 = vadd.f32 %v4593_v58, %v1079_v26 }
 0x24b   :  { %v4111_v30 = vpop.eup %4110 }
 0x24c   :  { %v1087_v31 = vadd.f32 1.0, %v4111_v30  ;;  %v4113_v33 = vpop.eup %4112 }
 0x24d   :  { %v1094_v34 = vadd.f32 1.0, %v4113_v33 }
 0x24e   :  { %4114 = vrcp.f32 %v1087_v31 }
 0x24f   :  { %4116 = vrcp.f32 %v1094_v34 }
 0x258   :  { %v4115_v38 = vpop.eup %4114 }
 0x259   :  { %v1097_v44 = vmul.f32 %v4115_v38, %v1080_v37  ;;  %v4117_v47 = vpop.eup %4116  ;;  %v1535_v38 = vld [vmem:[#allocation2 + $0x18] sm:$0xff] }
 0x25a   :  { %v1100_v48 = vsub.f32 1.0, %v4117_v47  ;;  %v1102_v51 = vmul.f32 %v4117_v47, %v4596_v7  ;;  %v1537_v47 = vld [vmem:[#allocation3 + $0x18] sm:$0xff] }
 0x25b   :  { %v1098_v46 = vadd.f32 %v1097_v44, %v869_v45 }
 0x25d   :  { %4118 = vtanh.f32 %v1098_v46 }
 0x267   :  { %v4119_v49 = vpop.eup %4118 }
 0x268   :  { %v1101_v50 = vmul.f32 %v4119_v49, %v1100_v48 }
 0x26a   :  { %v4669_v52 = vadd.f32 %v1102_v51, %v1101_v50 }
 0x26c   :  { %v1104_v53 = vmul.f32 1.442695, %v4669_v52  ;;  %3707 = vmatmul.mubr.msk.f32.vlgmr.msra.gmra.mrb[20].mxu1 %vm229_vm3, %v4669_v52 }
 0x26d   :  { %3722 = vmatprep.mubr.msk.f32.mxu1 %vm229_vm3, %v4543_v41 }
 0x26e   :  { %4120 = vpow2.f32 %v1104_v53 }
 0x278   :  { %v4121_v54 = vpop.eup %4120 }
 0x279   :  { %3679 = vmatprep.subr.msk.mxu0 %vm229_vm3, %v4121_v54 }
 0x27a   :  { %3680 = vmatpush3.xpose.msk.msra.mxu0 %vm229_vm3, %v4121_v54 }
 0x27b   :  { %3981 = vmatprep.subr.bf16.mxu0 %v4293_v13 }
 0x27d   :  { %3682 = vmatmul.mubr.msk.f32.vlgmr.msra.gmra.mrb[20].mxu0 %vm229_vm3, %v4609_v11 }
 0x27e   :  { %3983 = vmatpush3.bf16.msra.mxu0 %v4428_v10  ;;  %3684 = vmatprep.mubr.msk.f32.mxu0 %vm229_vm3, %v4616_v12 }
 0x27f   :  { %3984 = vmatprep.subr.bf16.mxu0 %v4293_v13 }
 0x281   :  { %3685 = vmatmul.mubr.msk.f32.gmra.mrb[22].mxu0 %vm229_vm3, %v4627_v40 }
 0x282   :  { %3986 = vmatpush3.bf16.msra.mxu0 %v4446_v19  ;;  %3695 = vmatprep.mubr.msk.f32.mxu0 %vm4294_vm1, %v4295_v28 }
 0x283   :  { %3993 = vmatprep.subr.bf16.mxu0 %v4293_v13 }
 0x285   :  { %3696 = vmatmul.mubr.msk.f32.vlgmr.msra.gmra.mrb[24].mxu0 %vm229_vm3, %v4669_v52 }
 0x286   :  { %3995 = vmatpush3.bf16.msra.mxu0 %v4499_v32  ;;  %3717 = vmatprep.mubr.msk.f32.mxu0 %vm4294_vm1, %v4295_v28 }
 0x287   :  { %3996 = vmatprep.subr.bf16.mxu0 %v4293_v13 }
 0x28a   :  { %3998 = vmatpush3.bf16.msra.mxu0 %v4517_v36 }
 0x28b   :  { %4005 = vmatprep.subr.bf16.mxu0 %v4293_v13 }
 0x28d   :  { %3718 = vmatmul.mubr.msk.f32.vlgmr.msra.gmra.mrb[26].mxu0 %vm229_vm3, %v4669_v52 }
 0x28e   :  { %4007 = vmatpush3.bf16.msra.mxu0 %v4489_v29  ;;  %3747 = vmatprep.mubr.msk.f32.mxu0 %vm4294_vm1, %v4295_v28 }
 0x28f   :  { %4008 = vmatprep.subr.bf16.mxu0 %v4293_v13 }
 0x292   :  { %4010 = vmatpush3.bf16.msra.mxu0 %v4509_v35 }
 0x33f   :  { %v1344_v55 = vpop.f32.mrb[20].mxu1 }
 0x340   :  { %v3708_v56 = vpop.f32.mrb[21].mxu1  ;;  %v1425_v4 = vadd.f32 %v1344_v55, %v1202_v2 }
 0x342   :  { %v3287_v5 = vmul.f32 -1.442695, %v1425_v4 }
 0x350   :  { %v3683_v57 = vpop.f32.mrb[20].mxu0 }
 0x351   :  { %3280 = vst.msk [vmem:[%s5034_s11 + $0x28] sm:$0xff] %vm859_vm7, %v3683_v57  ;;  %v1175_v59 = vpop.f32.mrb[21].mxu0 }
 0x352   :  { %3279 = vst.msk [vmem:[%s5034_s11 + $0x20] sm:$0xff] %vm859_vm7, %v1175_v59 }
 0x354   :  { %v3686_v60 = vpop.f32.mrb[22].mxu0 }
 0x355   :  { %3282 = vst.msk [vmem:[%s5034_s11 + $0x38] sm:$0xff] %vm859_vm7, %v3686_v60  ;;  %v1185_v61 = vpop.f32.mrb[23].mxu0 }
 0x356   :  { %3281 = vst.msk [vmem:[%s5034_s11 + $0x30] sm:$0xff] %vm859_vm7, %v1185_v61  ;;  %v1539_v61 = vld [vmem:[#allocation4 + $0x18] sm:$0xff] }
 0x358   :  { %v1274_v63 = vpop.f32.mrb[24].mxu0 }
 0x359   :  { %v1418_v0 = vadd.f32 %v1274_v63, %v1200_v62  ;;  %v3697_v1 = vpop.f32.mrb[25].mxu0 }
 0x35b   :  { %v3286_v3 = vmul.f32 -1.442695, %v1418_v0 }
 0x35d   :  { %4122 = vpow2.f32 %v3286_v3 }
 0x35e   :  { %4124 = vpow2.f32 %v3287_v5 }
 0x360   :  { %v1414_v6 = vpop.f32.mrb[26].mxu0 }
 0x361   :  { %v3719_v7 = vpop.f32.mrb[27].mxu0  ;;  %v1415_v43 = vadd.f32 %v4593_v58, %v1414_v6 }
 0x367   :  { %v4123_v8 = vpop.eup %4122 }
 0x368   :  { %v1422_v9 = vadd.f32 1.0, %v4123_v8  ;;  %v4125_v39 = vpop.eup %4124 }
 0x369   :  { %v1429_v42 = vadd.f32 1.0, %v4125_v39 }
 0x36a   :  { %4126 = vrcp.f32 %v1422_v9 }
 0x36b   :  { %4128 = vrcp.f32 %v1429_v42 }
 0x374   :  { %v4127_v14 = vpop.eup %4126 }
 0x375   :  { %v1432_v15 = vmul.f32 %v4127_v14, %v1415_v43  ;;  %v4129_v18 = vpop.eup %4128  ;;  %v1870_v14 = vld [vmem:[#allocation2 + $0x20] sm:$0xff] }
 0x376   :  { %v1435_v20 = vsub.f32 1.0, %v4129_v18  ;;  %v1437_v23 = vmul.f32 %v4129_v18, %v4669_v52  ;;  %v1872_v18 = vld [vmem:[#allocation3 + $0x20] sm:$0xff] }
 0x377   :  { %v1433_v17 = vadd.f32 %v1432_v15, %v1204_v16 }
 0x379   :  { %4130 = vtanh.f32 %v1433_v17 }
 0x383   :  { %v4131_v21 = vpop.eup %4130 }
 0x384   :  { %v1436_v22 = vmul.f32 %v4131_v21, %v1435_v20 }
 0x386   :  { %v4724_v24 = vadd.f32 %v1437_v23, %v1436_v22 }
 0x388   :  { %v1439_v25 = vmul.f32 1.442695, %v4724_v24  ;;  %3748 = vmatmul.mubr.msk.f32.vlgmr.msra.gmra.mrb[28].mxu0 %vm229_vm3, %v4724_v24 }
 0x389   :  { %3763 = vmatprep.mubr.msk.f32.mxu0 %vm229_vm3, %v4543_v41 }
 0x38a   :  { %4132 = vpow2.f32 %v1439_v25 }
 0x394   :  { %v4133_v26 = vpop.eup %4132 }
 0x395   :  { %3720 = vmatprep.subr.msk.mxu1 %vm229_vm3, %v4133_v26 }
 0x396   :  { %3721 = vmatpush3.xpose.msk.msra.mxu1 %vm229_vm3, %v4133_v26 }
 0x397   :  { %3999 = vmatprep.subr.bf16.mxu1 %v4293_v13 }
 0x399   :  { %3723 = vmatmul.mubr.msk.f32.vlgmr.msra.gmra.mrb[22].mxu1 %vm229_vm3, %v4609_v11 }
 0x39a   :  { %4001 = vmatpush3.bf16.msra.mxu1 %v4428_v10  ;;  %3725 = vmatprep.mubr.msk.f32.mxu1 %vm229_vm3, %v4616_v12 }
 0x39b   :  { %4002 = vmatprep.subr.bf16.mxu1 %v4293_v13 }
 0x39d   :  { %3726 = vmatmul.mubr.msk.f32.gmra.mrb[24].mxu1 %vm229_vm3, %v4627_v40 }
 0x39e   :  { %4004 = vmatpush3.bf16.msra.mxu1 %v4446_v19  ;;  %3736 = vmatprep.mubr.msk.f32.mxu1 %vm4294_vm1, %v4295_v28 }
 0x39f   :  { %4011 = vmatprep.subr.bf16.mxu1 %v4293_v13 }
 0x3a1   :  { %3737 = vmatmul.mubr.msk.f32.vlgmr.msra.gmra.mrb[26].mxu1 %vm229_vm3, %v4724_v24 }
 0x3a2   :  { %4013 = vmatpush3.bf16.msra.mxu1 %v4499_v32  ;;  %3758 = vmatprep.mubr.msk.f32.mxu1 %vm4294_vm1, %v4295_v28 }
 0x3a3   :  { %4014 = vmatprep.subr.bf16.mxu1 %v4293_v13 }
 0x3a6   :  { %4016 = vmatpush3.bf16.msra.mxu1 %v4517_v36 }
 0x3a7   :  { %4023 = vmatprep.subr.bf16.mxu1 %v4293_v13 }
 0x3a9   :  { %3759 = vmatmul.mubr.msk.f32.vlgmr.msra.gmra.mrb[28].mxu1 %vm229_vm3, %v4724_v24 }
 0x3aa   :  { %4025 = vmatpush3.bf16.msra.mxu1 %v4489_v29  ;;  %3788 = vmatprep.mubr.msk.f32.mxu1 %vm4294_vm1, %v4295_v28 }
 0x3ab   :  { %4026 = vmatprep.subr.bf16.mxu1 %v4293_v13 }
 0x3ae   :  { %4028 = vmatpush3.bf16.msra.mxu1 %v4509_v35 }
 0x45b   :  { %v1679_v27 = vpop.f32.mrb[28].mxu0 }
 0x45c   :  { %v3749_v30 = vpop.f32.mrb[29].mxu0  ;;  %v1760_v49 = vadd.f32 %v1679_v27, %v1537_v47 }
 0x45e   :  { %v3301_v50 = vmul.f32 -1.442695, %v1760_v49 }
 0x46c   :  { %v3724_v31 = vpop.f32.mrb[22].mxu1 }
 0x46d   :  { %3294 = vst.msk [vmem:[%s5034_s11 + $0x48] sm:$0xff] %vm859_vm7, %v3724_v31  ;;  %v1510_v33 = vpop.f32.mrb[23].mxu1 }
 0x46e   :  { %3293 = vst.msk [vmem:[%s5034_s11 + $0x40] sm:$0xff] %vm859_vm7, %v1510_v33 }
 0x470   :  { %v3727_v34 = vpop.f32.mrb[24].mxu1 }
 0x471   :  { %3296 = vst.msk [vmem:[%s5034_s11 + $0x58] sm:$0xff] %vm859_vm7, %v3727_v34  ;;  %v1520_v37 = vpop.f32.mrb[25].mxu1 }
 0x472   :  { %3295 = vst.msk [vmem:[%s5034_s11 + $0x50] sm:$0xff] %vm859_vm7, %v1520_v37  ;;  %v1874_v37 = vld [vmem:[#allocation4 + $0x20] sm:$0xff] }
 0x474   :  { %v1609_v44 = vpop.f32.mrb[26].mxu1 }
 0x475   :  { %v1753_v45 = vadd.f32 %v1609_v44, %v1535_v38  ;;  %v3738_v46 = vpop.f32.mrb[27].mxu1 }
 0x477   :  { %v3300_v48 = vmul.f32 -1.442695, %v1753_v45 }
 0x479   :  { %4134 = vpow2.f32 %v3300_v48 }
 0x47a   :  { %4136 = vpow2.f32 %v3301_v50 }
 0x47c   :  { %v1749_v51 = vpop.f32.mrb[28].mxu1 }
 0x47d   :  { %v3760_v52 = vpop.f32.mrb[29].mxu1  ;;  %v1750_v57 = vadd.f32 %v4593_v58, %v1749_v51 }
 0x483   :  { %v4135_v53 = vpop.eup %4134 }
 0x484   :  { %v1757_v54 = vadd.f32 1.0, %v4135_v53  ;;  %v4137_v55 = vpop.eup %4136 }
 0x485   :  { %v1764_v56 = vadd.f32 1.0, %v4137_v55 }
 0x486   :  { %4138 = vrcp.f32 %v1757_v54 }
 0x487   :  { %4140 = vrcp.f32 %v1764_v56 }
 0x490   :  { %v4139_v59 = vpop.eup %4138 }
 0x491   :  { %v1767_v60 = vmul.f32 %v4139_v59, %v1750_v57  ;;  %v4141_v63 = vpop.eup %4140  ;;  %v2205_v59 = vld [vmem:[#allocation2 + $0x28] sm:$0xff] }
 0x492   :  { %v1770_v0 = vsub.f32 1.0, %v4141_v63  ;;  %v1772_v3 = vmul.f32 %v4141_v63, %v4724_v24  ;;  %v2207_v63 = vld [vmem:[#allocation3 + $0x28] sm:$0xff] }
 0x493   :  { %v1768_v62 = vadd.f32 %v1767_v60, %v1539_v61 }
 0x495   :  { %4142 = vtanh.f32 %v1768_v62 }
 0x49f   :  { %v4143_v1 = vpop.eup %4142 }
 0x4a0   :  { %v1771_v2 = vmul.f32 %v4143_v1, %v1770_v0 }
 0x4a2   :  { %v4779_v4 = vadd.f32 %v1772_v3, %v1771_v2 }
 0x4a4   :  { %v1774_v5 = vmul.f32 1.442695, %v4779_v4  ;;  %3789 = vmatmul.mubr.msk.f32.vlgmr.msra.gmra.mrb[30].mxu1 %vm229_vm3, %v4779_v4 }
 0x4a5   :  { %3804 = vmatprep.mubr.msk.f32.mxu1 %vm229_vm3, %v4543_v41 }
 0x4a6   :  { %4144 = vpow2.f32 %v1774_v5 }
 0x4b0   :  { %v4145_v6 = vpop.eup %4144 }
 0x4b1   :  { %3761 = vmatprep.subr.msk.mxu0 %vm229_vm3, %v4145_v6 }
 0x4b2   :  { %3762 = vmatpush3.xpose.msk.msra.mxu0 %vm229_vm3, %v4145_v6 }
 0x4b3   :  { %4017 = vmatprep.subr.bf16.mxu0 %v4293_v13 }
 0x4b5   :  { %3764 = vmatmul.mubr.msk.f32.vlgmr.msra.gmra.mrb[30].mxu0 %vm229_vm3, %v4609_v11 }
 0x4b6   :  { %4019 = vmatpush3.bf16.msra.mxu0 %v4428_v10  ;;  %3766 = vmatprep.mubr.msk.f32.mxu0 %vm229_vm3, %v4616_v12 }
 0x4b7   :  { %4020 = vmatprep.subr.bf16.mxu0 %v4293_v13 }
 0x4b9   :  { %3767 = vmatmul.mubr.msk.f32.gmra.mrb[32].mxu0 %vm229_vm3, %v4627_v40 }
 0x4ba   :  { %4022 = vmatpush3.bf16.msra.mxu0 %v4446_v19  ;;  %3777 = vmatprep.mubr.msk.f32.mxu0 %vm4294_vm1, %v4295_v28 }
 0x4bb   :  { %4029 = vmatprep.subr.bf16.mxu0 %v4293_v13 }
 0x4bd   :  { %3778 = vmatmul.mubr.msk.f32.vlgmr.msra.gmra.mrb[34].mxu0 %vm229_vm3, %v4779_v4 }
 0x4be   :  { %4031 = vmatpush3.bf16.msra.mxu0 %v4499_v32  ;;  %3799 = vmatprep.mubr.msk.f32.mxu0 %vm4294_vm1, %v4295_v28 }
 0x4bf   :  { %4032 = vmatprep.subr.bf16.mxu0 %v4293_v13 }
 0x4c2   :  { %4034 = vmatpush3.bf16.msra.mxu0 %v4517_v36 }
 0x4c3   :  { %4041 = vmatprep.subr.bf16.mxu0 %v4293_v13 }
 0x4c5   :  { %3800 = vmatmul.mubr.msk.f32.vlgmr.msra.gmra.mrb[36].mxu0 %vm229_vm3, %v4779_v4 }
 0x4c6   :  { %4043 = vmatpush3.bf16.msra.mxu0 %v4489_v29  ;;  %3829 = vmatprep.mubr.msk.f32.mxu0 %vm4294_vm1, %v4295_v28 }
 0x4c7   :  { %4044 = vmatprep.subr.bf16.mxu0 %v4293_v13 }
 0x4ca   :  { %4046 = vmatpush3.bf16.msra.mxu0 %v4509_v35 }
 0x577   :  { %v2014_v7 = vpop.f32.mrb[30].mxu1 }
 0x578   :  { %v3790_v8 = vpop.f32.mrb[31].mxu1  ;;  %v2095_v21 = vadd.f32 %v2014_v7, %v1872_v18 }
 0x57a   :  { %v3315_v22 = vmul.f32 -1.442695, %v2095_v21 }
 0x588   :  { %v3765_v9 = vpop.f32.mrb[30].mxu0 }
 0x589   :  { %3308 = vst.msk [vmem:[%s5034_s11 + $0x68] sm:$0xff] %vm859_vm7, %v3765_v9  ;;  %v1845_v39 = vpop.f32.mrb[31].mxu0 }
 0x58a   :  { %3307 = vst.msk [vmem:[%s5034_s11 + $0x60] sm:$0xff] %vm859_vm7, %v1845_v39 }
 0x58c   :  { %v3768_v42 = vpop.f32.mrb[32].mxu0 }
 0x58d   :  { %3310 = vst.msk [vmem:[%s5034_s11 + $0x78] sm:$0xff] %vm859_vm7, %v3768_v42  ;;  %v1855_v43 = vpop.f32.mrb[33].mxu0 }
 0x58e   :  { %3309 = vst.msk [vmem:[%s5034_s11 + $0x70] sm:$0xff] %vm859_vm7, %v1855_v43  ;;  %v2209_v43 = vld [vmem:[#allocation4 + $0x28] sm:$0xff] }
 0x590   :  { %v1944_v15 = vpop.f32.mrb[34].mxu0 }
 0x591   :  { %v2088_v16 = vadd.f32 %v1944_v15, %v1870_v14  ;;  %v3779_v17 = vpop.f32.mrb[35].mxu0 }
 0x593   :  { %v3314_v20 = vmul.f32 -1.442695, %v2088_v16 }
 0x595   :  { %4146 = vpow2.f32 %v3314_v20 }
 0x596   :  { %4148 = vpow2.f32 %v3315_v22 }
 0x598   :  { %v2084_v23 = vpop.f32.mrb[36].mxu0 }
 0x599   :  { %v3801_v24 = vpop.f32.mrb[37].mxu0  ;;  %v2085_v31 = vadd.f32 %v4593_v58, %v2084_v23 }
 0x59f   :  { %v4147_v25 = vpop.eup %4146 }
 0x5a0   :  { %v2092_v26 = vadd.f32 1.0, %v4147_v25  ;;  %v4149_v27 = vpop.eup %4148 }
 0x5a1   :  { %v2099_v30 = vadd.f32 1.0, %v4149_v27 }
 0x5a2   :  { %4150 = vrcp.f32 %v2092_v26 }
 0x5a3   :  { %4152 = vrcp.f32 %v2099_v30  ;;  %v2540_v30 = vld [vmem:[#allocation2 + $0x30] sm:$0xff] }
 0x5ac   :  { %v4151_v33 = vpop.eup %4150 }
 0x5ad   :  { %v2102_v34 = vmul.f32 %v4151_v33, %v2085_v31  ;;  %v4153_v44 = vpop.eup %4152 }
 0x5ae   :  { %v2105_v45 = vsub.f32 1.0, %v4153_v44  ;;  %v2107_v48 = vmul.f32 %v4153_v44, %v4779_v4 }
 0x5af   :  { %v2103_v38 = vadd.f32 %v2102_v34, %v1874_v37  ;;  %v2542_v37 = vld [vmem:[#allocation3 + $0x30] sm:$0xff] }
 0x5b1   :  { %4154 = vtanh.f32 %v2103_v38 }
 0x5bb   :  { %v4155_v46 = vpop.eup %4154 }
 0x5bc   :  { %v2106_v47 = vmul.f32 %v4155_v46, %v2105_v45 }
 0x5be   :  { %v4834_v49 = vadd.f32 %v2107_v48, %v2106_v47 }
 0x5c0   :  { %v2109_v50 = vmul.f32 1.442695, %v4834_v49  ;;  %3830 = vmatmul.mubr.msk.f32.vlgmr.msra.gmra.mrb[38].mxu0 %vm229_vm3, %v4834_v49 }
 0x5c1   :  { %3845 = vmatprep.mubr.msk.f32.mxu0 %vm229_vm3, %v4543_v41 }
 0x5c2   :  { %4156 = vpow2.f32 %v2109_v50 }
 0x5cc   :  { %v4157_v51 = vpop.eup %4156 }
 0x5cd   :  { %3802 = vmatprep.subr.msk.mxu1 %vm229_vm3, %v4157_v51 }
 0x5ce   :  { %3803 = vmatpush3.xpose.msk.msra.mxu1 %vm229_vm3, %v4157_v51 }
 0x5cf   :  { %4035 = vmatprep.subr.bf16.mxu1 %v4293_v13 }
 0x5d1   :  { %3805 = vmatmul.mubr.msk.f32.vlgmr.msra.gmra.mrb[32].mxu1 %vm229_vm3, %v4609_v11 }
 0x5d2   :  { %4037 = vmatpush3.bf16.msra.mxu1 %v4428_v10  ;;  %3807 = vmatprep.mubr.msk.f32.mxu1 %vm229_vm3, %v4616_v12 }
 0x5d3   :  { %4038 = vmatprep.subr.bf16.mxu1 %v4293_v13 }
 0x5d5   :  { %3808 = vmatmul.mubr.msk.f32.gmra.mrb[34].mxu1 %vm229_vm3, %v4627_v40 }
 0x5d6   :  { %4040 = vmatpush3.bf16.msra.mxu1 %v4446_v19  ;;  %3818 = vmatprep.mubr.msk.f32.mxu1 %vm4294_vm1, %v4295_v28 }
 0x5d7   :  { %4047 = vmatprep.subr.bf16.mxu1 %v4293_v13 }
 0x5d9   :  { %3819 = vmatmul.mubr.msk.f32.vlgmr.msra.gmra.mrb[36].mxu1 %vm229_vm3, %v4834_v49 }
 0x5da   :  { %4049 = vmatpush3.bf16.msra.mxu1 %v4499_v32  ;;  %3840 = vmatprep.mubr.msk.f32.mxu1 %vm4294_vm1, %v4295_v28 }
 0x5db   :  { %4050 = vmatprep.subr.bf16.mxu1 %v4293_v13 }
 0x5de   :  { %4052 = vmatpush3.bf16.msra.mxu1 %v4517_v36 }
 0x5df   :  { %4059 = vmatprep.subr.bf16.mxu1 %v4293_v13 }
 0x5e1   :  { %3841 = vmatmul.mubr.msk.f32.vlgmr.msra.gmra.mrb[38].mxu1 %vm229_vm3, %v4834_v49 }
 0x5e2   :  { %4061 = vmatpush3.bf16.msra.mxu1 %v4489_v29  ;;  %3870 = vmatprep.mubr.msk.f32.mxu1 %vm4294_vm1, %v4295_v28 }
 0x5e3   :  { %4062 = vmatprep.subr.bf16.mxu1 %v4293_v13 }
 0x5e6   :  { %4064 = vmatpush3.bf16.msra.mxu1 %v4509_v35 }
 0x693   :  { %v2349_v52 = vpop.f32.mrb[38].mxu0 }
 0x694   :  { %v3831_v53 = vpop.f32.mrb[39].mxu0  ;;  %v2430_v1 = vadd.f32 %v2349_v52, %v2207_v63 }
 0x696   :  { %v3329_v2 = vmul.f32 -1.442695, %v2430_v1 }
 0x6a4   :  { %v3806_v54 = vpop.f32.mrb[32].mxu1 }
 0x6a5   :  { %3322 = vst.msk [vmem:[%s5034_s11 + $0x88] sm:$0xff] %vm859_vm7, %v3806_v54  ;;  %v2180_v55 = vpop.f32.mrb[33].mxu1 }
 0x6a6   :  { %3321 = vst.msk [vmem:[%s5034_s11 + $0x80] sm:$0xff] %vm859_vm7, %v2180_v55  ;;  %v2544_v55 = vld [vmem:[#allocation4 + $0x30] sm:$0xff] }
 0x6a8   :  { %v3809_v56 = vpop.f32.mrb[34].mxu1 }
 0x6a9   :  { %3324 = vst.msk [vmem:[%s5034_s11 + $0x98] sm:$0xff] %vm859_vm7, %v3809_v56  ;;  %v2190_v57 = vpop.f32.mrb[35].mxu1 }
 0x6aa   :  { %3323 = vst.msk [vmem:[%s5034_s11 + $0x90] sm:$0xff] %vm859_vm7, %v2190_v57 }
 0x6ac   :  { %v2279_v60 = vpop.f32.mrb[36].mxu1 }
 0x6ad   :  { %v2423_v61 = vadd.f32 %v2279_v60, %v2205_v59  ;;  %v3820_v62 = vpop.f32.mrb[37].mxu1 }
 0x6af   :  { %v3328_v0 = vmul.f32 -1.442695, %v2423_v61 }
 0x6b1   :  { %4158 = vpow2.f32 %v3328_v0 }
 0x6b2   :  { %4160 = vpow2.f32 %v3329_v2 }
 0x6b4   :  { %v2419_v3 = vpop.f32.mrb[38].mxu1 }
 0x6b5   :  { %v3842_v4 = vpop.f32.mrb[39].mxu1  ;;  %v2420_v9 = vadd.f32 %v4593_v58, %v2419_v3 }
 0x6bb   :  { %v4159_v5 = vpop.eup %4158 }
 0x6bc   :  { %v2427_v6 = vadd.f32 1.0, %v4159_v5  ;;  %v4161_v7 = vpop.eup %4160  ;;  %v2877_v5 = vld [vmem:[#allocation3 + $0x38] sm:$0xff] }
 0x6bd   :  { %v2434_v8 = vadd.f32 1.0, %v4161_v7 }
 0x6be   :  { %4162 = vrcp.f32 %v2427_v6 }
 0x6bf   :  { %4164 = vrcp.f32 %v2434_v8 }
 0x6c8   :  { %v4163_v39 = vpop.eup %4162 }
 0x6c9   :  { %v2437_v42 = vmul.f32 %v4163_v39, %v2420_v9  ;;  %v4165_v15 = vpop.eup %4164 }
 0x6ca   :  { %v2440_v16 = vsub.f32 1.0, %v4165_v15  ;;  %v2442_v20 = vmul.f32 %v4165_v15, %v4834_v49 }
 0x6cb   :  { %v2438_v14 = vadd.f32 %v2437_v42, %v2209_v43 }
 0x6cd   :  { %4166 = vtanh.f32 %v2438_v14 }
 0x6d7   :  { %v4167_v17 = vpop.eup %4166 }
 0x6d8   :  { %v2441_v18 = vmul.f32 %v4167_v17, %v2440_v16 }
 0x6da   :  { %v4889_v21 = vadd.f32 %v2442_v20, %v2441_v18  ;;  %v2879_v20 = vld [vmem:[#allocation4 + $0x38] sm:$0xff] }
 0x6dc   :  { %v2444_v22 = vmul.f32 1.442695, %v4889_v21  ;;  %3871 = vmatmul.mubr.msk.f32.vlgmr.msra.gmra.mrb[40].mxu1 %vm229_vm3, %v4889_v21 }
 0x6dd   :  { %3886 = vmatprep.mubr.msk.f32.mxu1 %vm229_vm3, %v4543_v41 }
 0x6de   :  { %4168 = vpow2.f32 %v2444_v22 }
 0x6e8   :  { %v4169_v23 = vpop.eup %4168 }
 0x6e9   :  { %3843 = vmatprep.subr.msk.mxu0 %vm229_vm3, %v4169_v23 }
 0x6ea   :  { %3844 = vmatpush3.xpose.msk.msra.mxu0 %vm229_vm3, %v4169_v23 }
 0x6eb   :  { %4053 = vmatprep.subr.bf16.mxu0 %v4293_v13 }
 0x6ed   :  { %3846 = vmatmul.mubr.msk.f32.vlgmr.msra.gmra.mrb[40].mxu0 %vm229_vm3, %v4609_v11 }
 0x6ee   :  { %4055 = vmatpush3.bf16.msra.mxu0 %v4428_v10  ;;  %3848 = vmatprep.mubr.msk.f32.mxu0 %vm229_vm3, %v4616_v12 }
 0x6ef   :  { %4056 = vmatprep.subr.bf16.mxu0 %v4293_v13 }
 0x6f1   :  { %3849 = vmatmul.mubr.msk.f32.gmra.mrb[42].mxu0 %vm229_vm3, %v4627_v40 }
 0x6f2   :  { %4058 = vmatpush3.bf16.msra.mxu0 %v4446_v19  ;;  %3859 = vmatprep.mubr.msk.f32.mxu0 %vm4294_vm1, %v4295_v28 }
 0x6f3   :  { %4065 = vmatprep.subr.bf16.mxu0 %v4293_v13 }
 0x6f5   :  { %3860 = vmatmul.mubr.msk.f32.vlgmr.msra.gmra.mrb[44].mxu0 %vm229_vm3, %v4889_v21 }
 0x6f6   :  { %4067 = vmatpush3.bf16.msra.mxu0 %v4499_v32  ;;  %3881 = vmatprep.mubr.msk.f32.mxu0 %vm4294_vm1, %v4295_v28 }
 0x6f7   :  { %4068 = vmatprep.subr.bf16.mxu0 %v4293_v13 }
 0x6fa   :  { %4070 = vmatpush3.bf16.msra.mxu0 %v4517_v36 }
 0x6fb   :  { %4077 = vmatprep.subr.bf16.mxu0 %v4293_v13 }
 0x6fd   :  { %3882 = vmatmul.mubr.msk.f32.vlgmr.msra.gmra.mrb[46].mxu0 %vm229_vm3, %v4889_v21 }
 0x6fe   :  { %4079 = vmatpush3.bf16.msra.mxu0 %v4489_v29  ;;  %3911 = vmatprep.mubr.msk.f32.mxu0 %vm4294_vm1, %v4295_v28 }
 0x6ff   :  { %4080 = vmatprep.subr.bf16.mxu0 %v4293_v13 }
 0x702   :  { %4082 = vmatpush3.bf16.msra.mxu0 %v4509_v35 }
 0x7af   :  { %v2684_v24 = vpop.f32.mrb[40].mxu1 }
 0x7b0   :  { %v3872_v25 = vpop.f32.mrb[41].mxu1  ;;  %v2765_v44 = vadd.f32 %v2684_v24, %v2542_v37 }
 0x7b2   :  { %v3343_v45 = vmul.f32 -1.442695, %v2765_v44 }
 0x7c0   :  { %v3847_v26 = vpop.f32.mrb[40].mxu0 }
 0x7c1   :  { %3336 = vst.msk [vmem:[%s5034_s11 + $0xa8] sm:$0xff] %vm859_vm7, %v3847_v26  ;;  %v2515_v27 = vpop.f32.mrb[41].mxu0 }
 0x7c2   :  { %3335 = vst.msk [vmem:[%s5034_s11 + $0xa0] sm:$0xff] %vm859_vm7, %v2515_v27 }
 0x7c4   :  { %v3850_v29 = vpop.f32.mrb[42].mxu0 }
 0x7c5   :  { %3338 = vst.msk [vmem:[%s5034_s11 + $0xb8] sm:$0xff] %vm859_vm7, %v3850_v29  ;;  %v2525_v35 = vpop.f32.mrb[43].mxu0 }
 0x7c6   :  { %3337 = vst.msk [vmem:[%s5034_s11 + $0xb0] sm:$0xff] %vm859_vm7, %v2525_v35 }
 0x7c8   :  { %v2614_v31 = vpop.f32.mrb[44].mxu0 }
 0x7c9   :  { %v2758_v33 = vadd.f32 %v2614_v31, %v2540_v30  ;;  %v3861_v34 = vpop.f32.mrb[45].mxu0 }
 0x7cb   :  { %v3342_v38 = vmul.f32 -1.442695, %v2758_v33 }
 0x7cd   :  { %4170 = vpow2.f32 %v3342_v38 }
 0x7ce   :  { %4172 = vpow2.f32 %v3343_v45 }
 0x7d0   :  { %v2754_v46 = vpop.f32.mrb[46].mxu0 }
 0x7d1   :  { %v3883_v47 = vpop.f32.mrb[47].mxu0  ;;  %v2755_v52 = vadd.f32 %v4593_v58, %v2754_v46 }
 0x7d7   :  { %v4171_v48 = vpop.eup %4170 }
 0x7d8   :  { %v2762_v49 = vadd.f32 1.0, %v4171_v48  ;;  %v4173_v50 = vpop.eup %4172 }
 0x7d9   :  { %v2769_v51 = vadd.f32 1.0, %v4173_v50 }
 0x7da   :  { %4174 = vrcp.f32 %v2762_v49 }
 0x7db   :  { %4176 = vrcp.f32 %v2769_v51 }
 0x7e4   :  { %v4175_v53 = vpop.eup %4174 }
 0x7e5   :  { %v2772_v54 = vmul.f32 %v4175_v53, %v2755_v52  ;;  %v4177_v57 = vpop.eup %4176 }
 0x7e6   :  { %v2775_v59 = vsub.f32 1.0, %v4177_v57  ;;  %v2777_v62 = vmul.f32 %v4177_v57, %v4889_v21 }
 0x7e7   :  { %v2773_v56 = vadd.f32 %v2772_v54, %v2544_v55 }
 0x7e9   :  { %4178 = vtanh.f32 %v2773_v56 }
 0x7f3   :  { %v4179_v60 = vpop.eup %4178 }
 0x7f4   :  { %v2776_v61 = vmul.f32 %v4179_v60, %v2775_v59 }
 0x7f6   :  { %v2778_v63 = vadd.f32 %v2777_v62, %v2776_v61 }
 0x7f8   :  { %v2779_v0 = vmul.f32 1.442695, %v2778_v63  ;;  %3912 = vmatmul.mubr.msk.f32.vlgmr.msra.gmra.mrb[48].mxu0 %vm229_vm3, %v2778_v63 }
 0x7f9   :  { %3927 = vmatprep.mubr.msk.f32.mxu0 %vm229_vm3, %v4543_v41 }
 0x7fa   :  { %4180 = vpow2.f32 %v2779_v0 }
 0x804   :  { %v4181_v1 = vpop.eup %4180 }
 0x805   :  { %3884 = vmatprep.subr.msk.mxu1 %vm229_vm3, %v4181_v1 }
 0x806   :  { %3885 = vmatpush3.xpose.msk.msra.mxu1 %vm229_vm3, %v4181_v1 }
 0x807   :  { %4071 = vmatprep.subr.bf16.mxu1 %v4293_v13 }
 0x809   :  { %3887 = vmatmul.mubr.msk.f32.vlgmr.msra.gmra.mrb[42].mxu1 %vm229_vm3, %v4609_v11 }
 0x80a   :  { %4073 = vmatpush3.bf16.msra.mxu1 %v4428_v10  ;;  %3889 = vmatprep.mubr.msk.f32.mxu1 %vm229_vm3, %v4616_v12 }
 0x80b   :  { %4074 = vmatprep.subr.bf16.mxu1 %v4293_v13 }
 0x80d   :  { %3890 = vmatmul.mubr.msk.f32.gmra.mrb[44].mxu1 %vm229_vm3, %v4627_v40 }
 0x80e   :  { %4076 = vmatpush3.bf16.msra.mxu1 %v4446_v19  ;;  %3900 = vmatprep.mubr.msk.f32.mxu1 %vm4294_vm1, %v4295_v28 }
 0x80f   :  { %4083 = vmatprep.subr.bf16.mxu1 %v4293_v13 }
 0x811   :  { %3901 = vmatmul.mubr.msk.f32.vlgmr.msra.gmra.mrb[46].mxu1 %vm229_vm3, %v2778_v63 }
 0x812   :  { %4085 = vmatpush3.bf16.msra.mxu1 %v4499_v32  ;;  %3922 = vmatprep.mubr.msk.f32.mxu1 %vm4294_vm1, %v4295_v28  ;;  %v2875_v32 = vld [vmem:[#allocation2 + $0x38] sm:$0xff] }
 0x813   :  { %4086 = vmatprep.subr.bf16.mxu1 %v4293_v13 }
 0x816   :  { %4088 = vmatpush3.bf16.msra.mxu1 %v4517_v36 }
 0x819   :  { %3923 = vmatmul.mubr.msk.f32.vlgmr.msra.gmra.mrb[48].mxu1 %vm229_vm3, %v2778_v63 }
 0x8cb   :  { %v3019_v10 = vpop.f32.mrb[48].mxu0 }
 0x8cc   :  { %v3913_v19 = vpop.f32.mrb[49].mxu0  ;;  %v3100_v7 = vadd.f32 %v3019_v10, %v2877_v5 }
 0x8ce   :  { %v3357_v8 = vmul.f32 -1.442695, %v3100_v7 }
 0x8dc   :  { %v3888_v41 = vpop.f32.mrb[42].mxu1 }
 0x8dd   :  { %3350 = vst.msk [vmem:[%s5034_s11 + $0xc8] sm:$0xff] %vm859_vm7, %v3888_v41  ;;  %v2850_v2 = vpop.f32.mrb[43].mxu1 }
 0x8de   :  { %3349 = vst.msk [vmem:[%s5034_s11 + $0xc0] sm:$0xff] %vm859_vm7, %v2850_v2 }
 0x8e0   :  { %v3891_v28 = vpop.f32.mrb[44].mxu1 }
 0x8e1   :  { %3352 = vst.msk [vmem:[%s5034_s11 + $0xd8] sm:$0xff] %vm859_vm7, %v3891_v28  ;;  %v2860_v13 = vpop.f32.mrb[45].mxu1 }
 0x8e2   :  { %3351 = vst.msk [vmem:[%s5034_s11 + $0xd0] sm:$0xff] %vm859_vm7, %v2860_v13 }
 0x8e4   :  { %v2949_v36 = vpop.f32.mrb[46].mxu1 }
 0x8e5   :  { %v3093_v3 = vadd.f32 %v2949_v36, %v2875_v32  ;;  %v3902_v4 = vpop.f32.mrb[47].mxu1 }
 0x8e7   :  { %v3356_v6 = vmul.f32 -1.442695, %v3093_v3 }
 0x8e9   :  { %4182 = vpow2.f32 %v3356_v6 }
 0x8ea   :  { %4184 = vpow2.f32 %v3357_v8 }
 0x8ec   :  { %v3089_v9 = vpop.f32.mrb[48].mxu1 }
 0x8ed   :  { %v3924_v39 = vpop.f32.mrb[49].mxu1  ;;  %v3090_v16 = vadd.f32 %v4593_v58, %v3089_v9 }
 0x8f3   :  { %v4183_v42 = vpop.eup %4182 }
 0x8f4   :  { %v3097_v43 = vadd.f32 1.0, %v4183_v42  ;;  %v4185_v14 = vpop.eup %4184 }
 0x8f5   :  { %v3104_v15 = vadd.f32 1.0, %v4185_v14 }
 0x8f6   :  { %4186 = vrcp.f32 %v3097_v43 }
 0x8f7   :  { %4188 = vrcp.f32 %v3104_v15 }
 0x900   :  { %v4187_v17 = vpop.eup %4186 }
 0x901   :  { %v3107_v18 = vmul.f32 %v4187_v17, %v3090_v16  ;;  %v4189_v22 = vpop.eup %4188 }
 0x902   :  { %v3110_v23 = vsub.f32 1.0, %v4189_v22  ;;  %v3112_v25 = vmul.f32 %v4189_v22, %v2778_v63 }
 0x903   :  { %v3108_v21 = vadd.f32 %v3107_v18, %v2879_v20 }
 0x905   :  { %4190 = vtanh.f32 %v3108_v21 }
 0x90f   :  { %v4191_v24 = vpop.eup %4190 }
 0x910   :  { %v3111_v26 = vmul.f32 %v4191_v24, %v3110_v23 }
 0x912   :  { %v3113_v27 = vadd.f32 %v3112_v25, %v3111_v26 }
 0x914   :  { %v3114_v29 = vmul.f32 1.442695, %v3113_v27  ;;  %3209 = vst.msk [vmem:[#allocation11] sm:$0xff] %vm229_vm3, %v3113_v27 }
 0x916   :  { %4192 = vpow2.f32 %v3114_v29 }
 0x920   :  { %v4193_v35 = vpop.eup %4192 }
 0x921   :  { %3925 = vmatprep.subr.msk.mxu0 %vm229_vm3, %v4193_v35 }
 0x922   :  { %3926 = vmatpush3.xpose.msk.msra.mxu0 %vm229_vm3, %v4193_v35 }
 0x925   :  { %3928 = vmatmul.mubr.msk.f32.vlgmr.msra.gmra.mrb[50].mxu0 %vm229_vm3, %v4609_v11 }
 0x926   :  { %3930 = vmatprep.mubr.msk.f32.mxu0 %vm229_vm3, %v4616_v12 }
 0x929   :  { %3931 = vmatmul.mubr.msk.f32.gmra.mrb[52].mxu0 %vm229_vm3, %v4627_v40 }
 0x92a   :  { %4271 = shalt.err (!%p4268_p0)
}
 0x92b   :  { %s4272_s25 = scalar_lea.hbm %s5035_s12, 128 }
 0x92c   :  { %p4273_p1 = scmp.ne.s32.totalorder %s5035_s12, %s4272_s25  ;;  %p4276_p2 = scmp.lt.u32.totalorder %s4272_s25, %s5035_s12 }
 0x92e   :  { %p4278_p3 = pnand %p4276_p2, %p4273_p1 }
 0x930   :  { %4281 = shalt.err (!%p4278_p3)
}
 0x931   :  { %3221 = dma.vmem_to_hbm [thread:$0]  %s3219_s23, 128, %s5035_s12, [#allocation7]  }
 0x9f8   :  { %v3929_v58 = vpop.f32.mrb[50].mxu0 }
 0x9f9   :  { %3364 = vst.msk [vmem:[%s5034_s11 + $0xe8] sm:$0xff] %vm859_vm7, %v3929_v58  ;;  %v3185_v11 = vpop.f32.mrb[51].mxu0 }
 0x9fa   :  { %3363 = vst.msk [vmem:[%s5034_s11 + $0xe0] sm:$0xff] %vm859_vm7, %v3185_v11 }
 0x9fc   :  { %v3932_v12 = vpop.f32.mrb[52].mxu0 }
 0x9fd   :  { %3366 = vst.msk [vmem:[%s5034_s11 + $0xf8] sm:$0xff] %vm859_vm7, %v3932_v12  ;;  %v3195_v40 = vpop.f32.mrb[53].mxu0 }
 0x9fe   :  { %3365 = vst.msk [vmem:[%s5034_s11 + $0xf0] sm:$0xff] %vm859_vm7, %v3195_v40 }
 0x9ff   :  { %4286 = dma.done.wait [#allocation7], 128  }
 0xa00   :  { %4287 = vsyncadd [#allocation7], 4294967168 }
 0xa01   :  { %3227 = vsyncpa [#allocation6], 1 }
 0xa02   :  { %3228 = vsyncpa [#allocation9], 1 }
 0xa03   :  { %3229 = vsyncpa [#allocation7], 1 }

</bundles_post_ra>
